<compile_context>
chip_gen: v7x
topology: tpu7x:2x2x1
jax: 0.10.0
libtpu: 0.0.40
codegen_flags: <defaults>
</compile_context>

<pallas_src>
import jax
import jax.numpy as jnp
from jax import lax
from jax.experimental import pallas as pl
from jax.experimental.pallas import tpu as pltpu


def gru_classify_kernel(x_ref, h0_ref, wih_ref, whh_ref, gbias_ref, bhhn_ref,
                        wlin_ref, blin_ref, logp_ref, hn_ref, gi_ref):
    # x_ref:     [S, I]   f32 (cast to bf16 in-kernel for the MXU)
    # h0_ref:    [1, H]   f32
    # wih_ref:   [I, 3H]  bf16   (W_ir | W_iz | W_in)^T, PyTorch gate order r,z,n
    # whh_ref:   [H, 3H]  bf16
    # gbias_ref: [1, 3H]  f32    b_ih with b_hh's r/z halves pre-folded in
    # bhhn_ref:  [1, H]   f32    n-gate half of b_hh (stays inside r*(...))
    # wlin_ref:  [H, OP]  bf16   classifier weight, zero-padded to OP (128) lanes
    # blin_ref:  [1, OP]  f32    padded lanes hold -1e30 (never win max / sum)
    # logp_ref:  [1, OP]  f32    lane-dense log-softmax (sliced to O in wrapper)
    # hn_ref:    [1, H]   f32    final hidden state
    # gi_ref:    [S, 3H]  f32    scratch: hoisted input projection (+ folded bias)
    H = h0_ref.shape[-1]
    S = x_ref.shape[0]
    w_dt = whh_ref.dtype

    # (1) Hoist the input projection (and the folded biases) off the serial
    #     path: one batched matmul instead of S latency-exposed M=1 pushes.
    gi_ref[...] = (
        jnp.dot(x_ref[...].astype(w_dt), wih_ref[...],
                preferred_element_type=jnp.float32)
        + gbias_ref[...])

    bhh_n = bhhn_ref[...]  # [1, H] — the only bias left on the serial path.

    def step(t, h):
        h_w = h.astype(w_dt)
        gi = gi_ref[pl.ds(t, 1), :]                                   # [1, 3H]
        # Per-gate column dots, r-gate columns pushed first so they pop first
        # (MRF is a FIFO on v5e/v6e); sigmoid(r) on the EUP overlaps the MXU
        # drain of the z / n blocks.  Slices are 128-lane aligned (free).
        gh_r = jnp.dot(h_w, whh_ref[:, 0:H],
                       preferred_element_type=jnp.float32)
        gh_z = jnp.dot(h_w, whh_ref[:, H:2 * H],
                       preferred_element_type=jnp.float32)
        gh_n = jnp.dot(h_w, whh_ref[:, 2 * H:3 * H],
                       preferred_element_type=jnp.float32)
        r = jax.nn.sigmoid(gi[:, 0:H] + gh_r)
        n = jnp.tanh(gi[:, 2 * H:3 * H] + r * (gh_n + bhh_n))
        z = jax.nn.sigmoid(gi[:, H:2 * H] + gh_z)
        return (1.0 - z) * n + z * h

    # (2) Fully unroll the short static recurrence (S is a compile-time const).
    h = lax.fori_loop(0, S, step, h0_ref[...], unroll=True)

    # Classifier head: issue the MXU push as soon as h is ready, then store hn,
    # then the numerically stable log-softmax epilogue on the lane-dense buffer.
    logits = (jnp.dot(h.astype(wlin_ref.dtype), wlin_ref[...],
                      preferred_element_type=jnp.float32) + blin_ref[...])
    hn_ref[...] = h
    m = jnp.max(logits, axis=-1, keepdims=True)
    lse = jnp.log(jnp.sum(jnp.exp(logits - m), axis=-1, keepdims=True)) + m
    logp_ref[...] = logits - lse


def prepare_params(params, *, weight_dtype=jnp.bfloat16, lane=128):
    """One-time parameter preparation (bf16 casts, bias folding, classifier
    padding).  Call once at load time; pass the result to my_gru_forward."""
    wih_t, whh_t, bih, bhh, wlin_t, blin = params
    H = whh_t.shape[0]
    output_size = wlin_t.shape[1]
    OP = max(lane, ((output_size + lane - 1) // lane) * lane)

    # Fold the r/z halves of b_hh into the hoisted input-projection bias.
    gbias = (bih.astype(jnp.float32)
             .at[:2 * H].add(bhh[:2 * H].astype(jnp.float32))
             .reshape(1, 3 * H))
    bhh_n = bhh[2 * H:3 * H].astype(jnp.float32).reshape(1, H)

    wlin_pad = jnp.zeros((H, OP), jnp.float32).at[:, :output_size].set(wlin_t)
    blin_pad = jnp.full((1, OP), -1e30, jnp.float32).at[:, :output_size].set(blin)

    return dict(
        wih=wih_t.astype(weight_dtype),
        whh=whh_t.astype(weight_dtype),
        gbias=gbias,
        bhh_n=bhh_n,
        wlin=wlin_pad.astype(weight_dtype),
        blin=blin_pad,
        hidden_size=H,
        output_size=output_size,
        padded_output=OP,
    )


def my_gru_forward(x, hidden, prepared):
    """Pallas equivalent of MyGRU.forward.

    x:      [seq_len, input_size]  (PyTorch `input` before unsqueeze(dim=1))
    hidden: [num_layers=1, 1, hidden_size]
    returns (log_softmax [1, output_size], hn [1, 1, hidden_size])
    """
    S, input_size = x.shape
    H = prepared["hidden_size"]
    O = prepared["output_size"]
    OP = prepared["padded_output"]

    h0 = hidden.reshape(1, H).astype(jnp.float32)

    flops = 2 * S * (input_size + H) * 3 * H + 2 * H * OP
    transcendentals = 3 * S * H + OP
    bytes_accessed = (
        4 * x.size
        + 2 * (prepared["wih"].size + prepared["whh"].size
               + prepared["wlin"].size)                               # bf16 in
        + 4 * (h0.size + prepared["gbias"].size
               + prepared["bhh_n"].size + OP)                         # f32 in
        + 4 * (OP + H))                                               # f32 out

    vmem = pl.BlockSpec(memory_space=pltpu.MemorySpace.VMEM)
    logp_pad, hn = pl.pallas_call(
        gru_classify_kernel,
        out_shape=(
            jax.ShapeDtypeStruct((1, OP), jnp.float32),
            jax.ShapeDtypeStruct((1, H), jnp.float32),
        ),
        in_specs=[vmem] * 8,
        out_specs=(vmem, vmem),
        scratch_shapes=[pltpu.VMEM((S, 3 * H), jnp.float32)],
        compiler_params=pltpu.CompilerParams(vmem_limit_bytes=4 * 1024 * 1024),
        cost_estimate=pl.CostEstimate(
            flops=flops,
            transcendentals=transcendentals,
            bytes_accessed=bytes_accessed),
    )(x.astype(jnp.float32), h0, prepared["wih"], prepared["whh"],
      prepared["gbias"], prepared["bhh_n"], prepared["wlin"], prepared["blin"])

    return logp_pad[:, :O], hn.reshape(1, 1, H)


def reference_forward(x, hidden, params, *, weight_dtype=jnp.bfloat16):
    """Pure-JAX reference matching torch.nn.GRU semantics (gate order r,z,n),
    using the same bf16 weight quantization as the kernel (f32 accumulation)."""
    wih_t, whh_t, bih, bhh, wlin_t, blin = params
    H = whh_t.shape[0]
    h = hidden.reshape(1, H).astype(jnp.float32)
    x_k = x.astype(weight_dtype)
    wih_k = wih_t.astype(weight_dtype)
    whh_k = whh_t.astype(weight_dtype)
    wlin_k = wlin_t.astype(weight_dtype)

    def step(h, x_t):
        gi = jnp.dot(x_t[None, :], wih_k,
                     preferred_element_type=jnp.float32) + bih[None, :]
        gh = jnp.dot(h.astype(weight_dtype), whh_k,
                     preferred_element_type=jnp.float32) + bhh[None, :]
        r = jax.nn.sigmoid(gi[:, 0:H] + gh[:, 0:H])
        z = jax.nn.sigmoid(gi[:, H:2 * H] + gh[:, H:2 * H])
        n = jnp.tanh(gi[:, 2 * H:3 * H] + r * gh[:, 2 * H:3 * H])
        return (1.0 - z) * n + z * h, None

    h, _ = lax.scan(step, h, x_k)
    logits = jnp.dot(h.astype(weight_dtype), wlin_k,
                     preferred_element_type=jnp.float32) + blin[None, :]
    return jax.nn.log_softmax(logits, axis=-1), h.reshape(1, 1, H)


if __name__ == "__main__":
    # Small shapes consistent with the module: seq-first input, batch=1.
    seq_len = 8
    input_size = 64
    hidden_size = 128
    output_size = 16
    num_layers = 1

    key = jax.random.PRNGKey(0)
    keys = jax.random.split(key, 8)

    # Deterministic parameter init (PyTorch-style uniform(-1/sqrt(H), 1/sqrt(H))).
    bound = 1.0 / jnp.sqrt(jnp.float32(hidden_size))
    wih_t = jax.random.uniform(keys[0], (input_size, 3 * hidden_size),
                               jnp.float32, -bound, bound)
    whh_t = jax.random.uniform(keys[1], (hidden_size, 3 * hidden_size),
                               jnp.float32, -bound, bound)
    bih = jax.random.uniform(keys[2], (3 * hidden_size,), jnp.float32, -bound, bound)
    bhh = jax.random.uniform(keys[3], (3 * hidden_size,), jnp.float32, -bound, bound)
    wlin_t = jax.random.uniform(keys[4], (hidden_size, output_size),
                                jnp.float32, -bound, bound)
    blin = jax.random.uniform(keys[5], (output_size,), jnp.float32, -bound, bound)
    params = (wih_t, whh_t, bih, bhh, wlin_t, blin)

    # One-time weight preparation (hoisted out of the forward call).
    prepared = prepare_params(params)

    # Example input (e.g. one-hot-ish char sequence) and MyGRU.inithidden().
    x = jax.random.normal(keys[6], (seq_len, input_size), jnp.float32)
    hidden0 = jnp.zeros((num_layers, 1, hidden_size), jnp.float32)

    logp, hn = my_gru_forward(x, hidden0, prepared)
    jax.block_until_ready((logp, hn))

    ref_logp, ref_hn = reference_forward(x, hidden0, params)
    assert logp.shape == (1, output_size) and hn.shape == (1, 1, hidden_size)
    assert bool(jnp.all(jnp.isfinite(logp)))
    assert jnp.allclose(logp, ref_logp, atol=1e-3, rtol=1e-3)
    assert jnp.allclose(hn, ref_hn, atol=1e-3, rtol=1e-3)

    print("KERNEL_OK")
</pallas_src>

<mosaic_0001>
module attributes {stable_mosaic.version = 11 : i64} {
  func.func @gru_classify_kernel(%arg0: memref<8x64xf32, #tpu.memory_space<vmem>>, %arg1: memref<1x128xf32, #tpu.memory_space<vmem>>, %arg2: memref<64x384xbf16, #tpu.memory_space<vmem>>, %arg3: memref<128x384xbf16, #tpu.memory_space<vmem>>, %arg4: memref<1x384xf32, #tpu.memory_space<vmem>>, %arg5: memref<1x128xf32, #tpu.memory_space<vmem>>, %arg6: memref<128x128xbf16, #tpu.memory_space<vmem>>, %arg7: memref<1x128xf32, #tpu.memory_space<vmem>>, %arg8: memref<1x128xf32, #tpu.memory_space<vmem>>, %arg9: memref<1x128xf32, #tpu.memory_space<vmem>>, %arg10: memref<8x384xf32, #tpu.memory_space<vmem>>) attributes {dimension_semantics = [], scalar_prefetch = 0 : i64, scratch_operands = 1 : i64, tpu.core_type = #tpu.core_type<tc>} {
    %c0 = arith.constant 0 : index
    %c0_0 = arith.constant 0 : index
    %0 = vector.load %arg0[%c0, %c0_0] : memref<8x64xf32, #tpu.memory_space<vmem>>, vector<8x64xf32>
    %1 = arith.truncf %0 : vector<8x64xf32> to vector<8x64xbf16>
    %c0_1 = arith.constant 0 : index
    %c0_2 = arith.constant 0 : index
    %2 = vector.load %arg2[%c0_1, %c0_2] : memref<64x384xbf16, #tpu.memory_space<vmem>>, vector<64x384xbf16>
    %cst = arith.constant dense<0.000000e+00> : vector<8x384xf32>
    %3 = tpu.matmul %1, %2, %cst {dimension_numbers = #tpu.dot_dimension_numbers<[1], [0], [0], [1], [0, 0, 1, 1], [], []>} : vector<8x64xbf16>, vector<64x384xbf16>, vector<8x384xf32> -> vector<8x384xf32>
    %c0_3 = arith.constant 0 : index
    %c0_4 = arith.constant 0 : index
    %4 = vector.load %arg4[%c0_3, %c0_4] : memref<1x384xf32, #tpu.memory_space<vmem>>, vector<1x384xf32>
    %5 = vector.broadcast %4 : vector<1x384xf32> to vector<8x384xf32>
    %6 = arith.addf %3, %5 : vector<8x384xf32>
    %c0_5 = arith.constant 0 : index
    %c0_6 = arith.constant 0 : index
    %7 = vector.load %arg10[%c0_5, %c0_6] : memref<8x384xf32, #tpu.memory_space<vmem>>, vector<8x384xf32>
    tpu.vector_store %arg10[%c0_5, %c0_6], %6 {strides = array<i32>} : memref<8x384xf32, #tpu.memory_space<vmem>>, vector<8x384xf32>,
    %c0_7 = arith.constant 0 : index
    %c0_8 = arith.constant 0 : index
    %8 = vector.load %arg5[%c0_7, %c0_8] : memref<1x128xf32, #tpu.memory_space<vmem>>, vector<1x128xf32>
    %c0_9 = arith.constant 0 : index
    %c0_10 = arith.constant 0 : index
    %9 = vector.load %arg1[%c0_9, %c0_10] : memref<1x128xf32, #tpu.memory_space<vmem>>, vector<1x128xf32>
    %c0_i32 = arith.constant 0 : i32
    %10 = arith.truncf %9 : vector<1x128xf32> to vector<1x128xbf16>
    %11 = arith.index_cast %c0_i32 : i32 to index
    %c0_11 = arith.constant 0 : index
    %12 = vector.load %arg10[%11, %c0_11] : memref<8x384xf32, #tpu.memory_space<vmem>>, vector<1x384xf32>
    %c0_12 = arith.constant 0 : index
    %c0_13 = arith.constant 0 : index
    %13 = vector.load %arg3[%c0_12, %c0_13] : memref<128x384xbf16, #tpu.memory_space<vmem>>, vector<128x128xbf16>
    %cst_14 = arith.constant dense<0.000000e+00> : vector<1x128xf32>
    %14 = tpu.matmul %10, %13, %cst_14 {dimension_numbers = #tpu.dot_dimension_numbers<[1], [0], [0], [1], [0, 0, 1, 1], [], []>} : vector<1x128xbf16>, vector<128x128xbf16>, vector<1x128xf32> -> vector<1x128xf32>
    %c0_15 = arith.constant 0 : index
    %c128 = arith.constant 128 : index
    %15 = vector.load %arg3[%c0_15, %c128] : memref<128x384xbf16, #tpu.memory_space<vmem>>, vector<128x128xbf16>
    %cst_16 = arith.constant dense<0.000000e+00> : vector<1x128xf32>
    %16 = tpu.matmul %10, %15, %cst_16 {dimension_numbers = #tpu.dot_dimension_numbers<[1], [0], [0], [1], [0, 0, 1, 1], [], []>} : vector<1x128xbf16>, vector<128x128xbf16>, vector<1x128xf32> -> vector<1x128xf32>
    %c0_17 = arith.constant 0 : index
    %c256 = arith.constant 256 : index
    %17 = vector.load %arg3[%c0_17, %c256] : memref<128x384xbf16, #tpu.memory_space<vmem>>, vector<128x128xbf16>
    %cst_18 = arith.constant dense<0.000000e+00> : vector<1x128xf32>
    %18 = tpu.matmul %10, %17, %cst_18 {dimension_numbers = #tpu.dot_dimension_numbers<[1], [0], [0], [1], [0, 0, 1, 1], [], []>} : vector<1x128xbf16>, vector<128x128xbf16>, vector<1x128xf32> -> vector<1x128xf32>
    %19 = vector.extract_strided_slice %12 {offsets = [0, 0], sizes = [1, 128], strides = [1, 1]} : vector<1x384xf32> to vector<1x128xf32>
    %20 = arith.addf %19, %14 : vector<1x128xf32>
    %21 = arith.negf %20 : vector<1x128xf32>
    %22 = math.exp %21 : vector<1x128xf32>
    %cst_19 = arith.constant 1.000000e+00 : f32
    %23 = vector.broadcast %cst_19 : f32 to vector<1x128xf32>
    %24 = arith.addf %23, %22 : vector<1x128xf32>
    %25 = arith.divf %23, %24 : vector<1x128xf32>
    %26 = vector.extract_strided_slice %12 {offsets = [0, 256], sizes = [1, 128], strides = [1, 1]} : vector<1x384xf32> to vector<1x128xf32>
    %27 = arith.addf %18, %8 : vector<1x128xf32>
    %28 = arith.mulf %25, %27 : vector<1x128xf32>
    %29 = arith.addf %26, %28 : vector<1x128xf32>
    %30 = math.tanh %29 : vector<1x128xf32>
    %31 = vector.extract_strided_slice %12 {offsets = [0, 128], sizes = [1, 128], strides = [1, 1]} : vector<1x384xf32> to vector<1x128xf32>
    %32 = arith.addf %31, %16 : vector<1x128xf32>
    %33 = arith.negf %32 : vector<1x128xf32>
    %34 = math.exp %33 : vector<1x128xf32>
    %cst_20 = arith.constant 1.000000e+00 : f32
    %35 = vector.broadcast %cst_20 : f32 to vector<1x128xf32>
    %36 = arith.addf %35, %34 : vector<1x128xf32>
    %37 = arith.divf %35, %36 : vector<1x128xf32>
    %cst_21 = arith.constant 1.000000e+00 : f32
    %38 = vector.broadcast %cst_21 : f32 to vector<1x128xf32>
    %39 = arith.subf %38, %37 : vector<1x128xf32>
    %40 = arith.mulf %39, %30 : vector<1x128xf32>
    %41 = arith.mulf %37, %9 : vector<1x128xf32>
    %42 = arith.addf %40, %41 : vector<1x128xf32>
    %c1_i32 = arith.constant 1 : i32
    %43 = arith.truncf %42 : vector<1x128xf32> to vector<1x128xbf16>
    %44 = arith.index_cast %c1_i32 : i32 to index
    %c0_22 = arith.constant 0 : index
    %45 = vector.load %arg10[%44, %c0_22] : memref<8x384xf32, #tpu.memory_space<vmem>>, vector<1x384xf32>
    %c0_23 = arith.constant 0 : index
    %c0_24 = arith.constant 0 : index
    %46 = vector.load %arg3[%c0_23, %c0_24] : memref<128x384xbf16, #tpu.memory_space<vmem>>, vector<128x128xbf16>
    %cst_25 = arith.constant dense<0.000000e+00> : vector<1x128xf32>
    %47 = tpu.matmul %43, %46, %cst_25 {dimension_numbers = #tpu.dot_dimension_numbers<[1], [0], [0], [1], [0, 0, 1, 1], [], []>} : vector<1x128xbf16>, vector<128x128xbf16>, vector<1x128xf32> -> vector<1x128xf32>
    %c0_26 = arith.constant 0 : index
    %c128_27 = arith.constant 128 : index
    %48 = vector.load %arg3[%c0_26, %c128_27] : memref<128x384xbf16, #tpu.memory_space<vmem>>, vector<128x128xbf16>
    %cst_28 = arith.constant dense<0.000000e+00> : vector<1x128xf32>
    %49 = tpu.matmul %43, %48, %cst_28 {dimension_numbers = #tpu.dot_dimension_numbers<[1], [0], [0], [1], [0, 0, 1, 1], [], []>} : vector<1x128xbf16>, vector<128x128xbf16>, vector<1x128xf32> -> vector<1x128xf32>
    %c0_29 = arith.constant 0 : index
    %c256_30 = arith.constant 256 : index
    %50 = vector.load %arg3[%c0_29, %c256_30] : memref<128x384xbf16, #tpu.memory_space<vmem>>, vector<128x128xbf16>
    %cst_31 = arith.constant dense<0.000000e+00> : vector<1x128xf32>
    %51 = tpu.matmul %43, %50, %cst_31 {dimension_numbers = #tpu.dot_dimension_numbers<[1], [0], [0], [1], [0, 0, 1, 1], [], []>} : vector<1x128xbf16>, vector<128x128xbf16>, vector<1x128xf32> -> vector<1x128xf32>
    %52 = vector.extract_strided_slice %45 {offsets = [0, 0], sizes = [1, 128], strides = [1, 1]} : vector<1x384xf32> to vector<1x128xf32>
    %53 = arith.addf %52, %47 : vector<1x128xf32>
    %54 = arith.negf %53 : vector<1x128xf32>
    %55 = math.exp %54 : vector<1x128xf32>
    %cst_32 = arith.constant 1.000000e+00 : f32
    %56 = vector.broadcast %cst_32 : f32 to vector<1x128xf32>
    %57 = arith.addf %56, %55 : vector<1x128xf32>
    %58 = arith.divf %56, %57 : vector<1x128xf32>
    %59 = vector.extract_strided_slice %45 {offsets = [0, 256], sizes = [1, 128], strides = [1, 1]} : vector<1x384xf32> to vector<1x128xf32>
    %60 = arith.addf %51, %8 : vector<1x128xf32>
    %61 = arith.mulf %58, %60 : vector<1x128xf32>
    %62 = arith.addf %59, %61 : vector<1x128xf32>
    %63 = math.tanh %62 : vector<1x128xf32>
    %64 = vector.extract_strided_slice %45 {offsets = [0, 128], sizes = [1, 128], strides = [1, 1]} : vector<1x384xf32> to vector<1x128xf32>
    %65 = arith.addf %64, %49 : vector<1x128xf32>
    %66 = arith.negf %65 : vector<1x128xf32>
    %67 = math.exp %66 : vector<1x128xf32>
    %cst_33 = arith.constant 1.000000e+00 : f32
    %68 = vector.broadcast %cst_33 : f32 to vector<1x128xf32>
    %69 = arith.addf %68, %67 : vector<1x128xf32>
    %70 = arith.divf %68, %69 : vector<1x128xf32>
    %cst_34 = arith.constant 1.000000e+00 : f32
    %71 = vector.broadcast %cst_34 : f32 to vector<1x128xf32>
    %72 = arith.subf %71, %70 : vector<1x128xf32>
    %73 = arith.mulf %72, %63 : vector<1x128xf32>
    %74 = arith.mulf %70, %42 : vector<1x128xf32>
    %75 = arith.addf %73, %74 : vector<1x128xf32>
    %c2_i32 = arith.constant 2 : i32
    %76 = arith.truncf %75 : vector<1x128xf32> to vector<1x128xbf16>
    %77 = arith.index_cast %c2_i32 : i32 to index
    %c0_35 = arith.constant 0 : index
    %78 = vector.load %arg10[%77, %c0_35] : memref<8x384xf32, #tpu.memory_space<vmem>>, vector<1x384xf32>
    %c0_36 = arith.constant 0 : index
    %c0_37 = arith.constant 0 : index
    %79 = vector.load %arg3[%c0_36, %c0_37] : memref<128x384xbf16, #tpu.memory_space<vmem>>, vector<128x128xbf16>
    %cst_38 = arith.constant dense<0.000000e+00> : vector<1x128xf32>
    %80 = tpu.matmul %76, %79, %cst_38 {dimension_numbers = #tpu.dot_dimension_numbers<[1], [0], [0], [1], [0, 0, 1, 1], [], []>} : vector<1x128xbf16>, vector<128x128xbf16>, vector<1x128xf32> -> vector<1x128xf32>
    %c0_39 = arith.constant 0 : index
    %c128_40 = arith.constant 128 : index
    %81 = vector.load %arg3[%c0_39, %c128_40] : memref<128x384xbf16, #tpu.memory_space<vmem>>, vector<128x128xbf16>
    %cst_41 = arith.constant dense<0.000000e+00> : vector<1x128xf32>
    %82 = tpu.matmul %76, %81, %cst_41 {dimension_numbers = #tpu.dot_dimension_numbers<[1], [0], [0], [1], [0, 0, 1, 1], [], []>} : vector<1x128xbf16>, vector<128x128xbf16>, vector<1x128xf32> -> vector<1x128xf32>
    %c0_42 = arith.constant 0 : index
    %c256_43 = arith.constant 256 : index
    %83 = vector.load %arg3[%c0_42, %c256_43] : memref<128x384xbf16, #tpu.memory_space<vmem>>, vector<128x128xbf16>
    %cst_44 = arith.constant dense<0.000000e+00> : vector<1x128xf32>
    %84 = tpu.matmul %76, %83, %cst_44 {dimension_numbers = #tpu.dot_dimension_numbers<[1], [0], [0], [1], [0, 0, 1, 1], [], []>} : vector<1x128xbf16>, vector<128x128xbf16>, vector<1x128xf32> -> vector<1x128xf32>
    %85 = vector.extract_strided_slice %78 {offsets = [0, 0], sizes = [1, 128], strides = [1, 1]} : vector<1x384xf32> to vector<1x128xf32>
    %86 = arith.addf %85, %80 : vector<1x128xf32>
    %87 = arith.negf %86 : vector<1x128xf32>
    %88 = math.exp %87 : vector<1x128xf32>
    %cst_45 = arith.constant 1.000000e+00 : f32
    %89 = vector.broadcast %cst_45 : f32 to vector<1x128xf32>
    %90 = arith.addf %89, %88 : vector<1x128xf32>
    %91 = arith.divf %89, %90 : vector<1x128xf32>
    %92 = vector.extract_strided_slice %78 {offsets = [0, 256], sizes = [1, 128], strides = [1, 1]} : vector<1x384xf32> to vector<1x128xf32>
    %93 = arith.addf %84, %8 : vector<1x128xf32>
    %94 = arith.mulf %91, %93 : vector<1x128xf32>
    %95 = arith.addf %92, %94 : vector<1x128xf32>
    %96 = math.tanh %95 : vector<1x128xf32>
    %97 = vector.extract_strided_slice %78 {offsets = [0, 128], sizes = [1, 128], strides = [1, 1]} : vector<1x384xf32> to vector<1x128xf32>
    %98 = arith.addf %97, %82 : vector<1x128xf32>
    %99 = arith.negf %98 : vector<1x128xf32>
    %100 = math.exp %99 : vector<1x128xf32>
    %cst_46 = arith.constant 1.000000e+00 : f32
    %101 = vector.broadcast %cst_46 : f32 to vector<1x128xf32>
    %102 = arith.addf %101, %100 : vector<1x128xf32>
    %103 = arith.divf %101, %102 : vector<1x128xf32>
    %cst_47 = arith.constant 1.000000e+00 : f32
    %104 = vector.broadcast %cst_47 : f32 to vector<1x128xf32>
    %105 = arith.subf %104, %103 : vector<1x128xf32>
    %106 = arith.mulf %105, %96 : vector<1x128xf32>
    %107 = arith.mulf %103, %75 : vector<1x128xf32>
    %108 = arith.addf %106, %107 : vector<1x128xf32>
    %c3_i32 = arith.constant 3 : i32
    %109 = arith.truncf %108 : vector<1x128xf32> to vector<1x128xbf16>
    %110 = arith.index_cast %c3_i32 : i32 to index
    %c0_48 = arith.constant 0 : index
    %111 = vector.load %arg10[%110, %c0_48] : memref<8x384xf32, #tpu.memory_space<vmem>>, vector<1x384xf32>
    %c0_49 = arith.constant 0 : index
    %c0_50 = arith.constant 0 : index
    %112 = vector.load %arg3[%c0_49, %c0_50] : memref<128x384xbf16, #tpu.memory_space<vmem>>, vector<128x128xbf16>
    %cst_51 = arith.constant dense<0.000000e+00> : vector<1x128xf32>
    %113 = tpu.matmul %109, %112, %cst_51 {dimension_numbers = #tpu.dot_dimension_numbers<[1], [0], [0], [1], [0, 0, 1, 1], [], []>} : vector<1x128xbf16>, vector<128x128xbf16>, vector<1x128xf32> -> vector<1x128xf32>
    %c0_52 = arith.constant 0 : index
    %c128_53 = arith.constant 128 : index
    %114 = vector.load %arg3[%c0_52, %c128_53] : memref<128x384xbf16, #tpu.memory_space<vmem>>, vector<128x128xbf16>
    %cst_54 = arith.constant dense<0.000000e+00> : vector<1x128xf32>
    %115 = tpu.matmul %109, %114, %cst_54 {dimension_numbers = #tpu.dot_dimension_numbers<[1], [0], [0], [1], [0, 0, 1, 1], [], []>} : vector<1x128xbf16>, vector<128x128xbf16>, vector<1x128xf32> -> vector<1x128xf32>
    %c0_55 = arith.constant 0 : index
    %c256_56 = arith.constant 256 : index
    %116 = vector.load %arg3[%c0_55, %c256_56] : memref<128x384xbf16, #tpu.memory_space<vmem>>, vector<128x128xbf16>
    %cst_57 = arith.constant dense<0.000000e+00> : vector<1x128xf32>
    %117 = tpu.matmul %109, %116, %cst_57 {dimension_numbers = #tpu.dot_dimension_numbers<[1], [0], [0], [1], [0, 0, 1, 1], [], []>} : vector<1x128xbf16>, vector<128x128xbf16>, vector<1x128xf32> -> vector<1x128xf32>
    %118 = vector.extract_strided_slice %111 {offsets = [0, 0], sizes = [1, 128], strides = [1, 1]} : vector<1x384xf32> to vector<1x128xf32>
    %119 = arith.addf %118, %113 : vector<1x128xf32>
    %120 = arith.negf %119 : vector<1x128xf32>
    %121 = math.exp %120 : vector<1x128xf32>
    %cst_58 = arith.constant 1.000000e+00 : f32
    %122 = vector.broadcast %cst_58 : f32 to vector<1x128xf32>
    %123 = arith.addf %122, %121 : vector<1x128xf32>
    %124 = arith.divf %122, %123 : vector<1x128xf32>
    %125 = vector.extract_strided_slice %111 {offsets = [0, 256], sizes = [1, 128], strides = [1, 1]} : vector<1x384xf32> to vector<1x128xf32>
    %126 = arith.addf %117, %8 : vector<1x128xf32>
    %127 = arith.mulf %124, %126 : vector<1x128xf32>
    %128 = arith.addf %125, %127 : vector<1x128xf32>
    %129 = math.tanh %128 : vector<1x128xf32>
    %130 = vector.extract_strided_slice %111 {offsets = [0, 128], sizes = [1, 128], strides = [1, 1]} : vector<1x384xf32> to vector<1x128xf32>
    %131 = arith.addf %130, %115 : vector<1x128xf32>
    %132 = arith.negf %131 : vector<1x128xf32>
    %133 = math.exp %132 : vector<1x128xf32>
    %cst_59 = arith.constant 1.000000e+00 : f32
    %134 = vector.broadcast %cst_59 : f32 to vector<1x128xf32>
    %135 = arith.addf %134, %133 : vector<1x128xf32>
    %136 = arith.divf %134, %135 : vector<1x128xf32>
    %cst_60 = arith.constant 1.000000e+00 : f32
    %137 = vector.broadcast %cst_60 : f32 to vector<1x128xf32>
    %138 = arith.subf %137, %136 : vector<1x128xf32>
    %139 = arith.mulf %138, %129 : vector<1x128xf32>
    %140 = arith.mulf %136, %108 : vector<1x128xf32>
    %141 = arith.addf %139, %140 : vector<1x128xf32>
    %c4_i32 = arith.constant 4 : i32
    %142 = arith.truncf %141 : vector<1x128xf32> to vector<1x128xbf16>
    %143 = arith.index_cast %c4_i32 : i32 to index
    %c0_61 = arith.constant 0 : index
    %144 = vector.load %arg10[%143, %c0_61] : memref<8x384xf32, #tpu.memory_space<vmem>>, vector<1x384xf32>
    %c0_62 = arith.constant 0 : index
    %c0_63 = arith.constant 0 : index
    %145 = vector.load %arg3[%c0_62, %c0_63] : memref<128x384xbf16, #tpu.memory_space<vmem>>, vector<128x128xbf16>
    %cst_64 = arith.constant dense<0.000000e+00> : vector<1x128xf32>
    %146 = tpu.matmul %142, %145, %cst_64 {dimension_numbers = #tpu.dot_dimension_numbers<[1], [0], [0], [1], [0, 0, 1, 1], [], []>} : vector<1x128xbf16>, vector<128x128xbf16>, vector<1x128xf32> -> vector<1x128xf32>
    %c0_65 = arith.constant 0 : index
    %c128_66 = arith.constant 128 : index
    %147 = vector.load %arg3[%c0_65, %c128_66] : memref<128x384xbf16, #tpu.memory_space<vmem>>, vector<128x128xbf16>
    %cst_67 = arith.constant dense<0.000000e+00> : vector<1x128xf32>
    %148 = tpu.matmul %142, %147, %cst_67 {dimension_numbers = #tpu.dot_dimension_numbers<[1], [0], [0], [1], [0, 0, 1, 1], [], []>} : vector<1x128xbf16>, vector<128x128xbf16>, vector<1x128xf32> -> vector<1x128xf32>
    %c0_68 = arith.constant 0 : index
    %c256_69 = arith.constant 256 : index
    %149 = vector.load %arg3[%c0_68, %c256_69] : memref<128x384xbf16, #tpu.memory_space<vmem>>, vector<128x128xbf16>
    %cst_70 = arith.constant dense<0.000000e+00> : vector<1x128xf32>
    %150 = tpu.matmul %142, %149, %cst_70 {dimension_numbers = #tpu.dot_dimension_numbers<[1], [0], [0], [1], [0, 0, 1, 1], [], []>} : vector<1x128xbf16>, vector<128x128xbf16>, vector<1x128xf32> -> vector<1x128xf32>
    %151 = vector.extract_strided_slice %144 {offsets = [0, 0], sizes = [1, 128], strides = [1, 1]} : vector<1x384xf32> to vector<1x128xf32>
    %152 = arith.addf %151, %146 : vector<1x128xf32>
    %153 = arith.negf %152 : vector<1x128xf32>
    %154 = math.exp %153 : vector<1x128xf32>
    %cst_71 = arith.constant 1.000000e+00 : f32
    %155 = vector.broadcast %cst_71 : f32 to vector<1x128xf32>
    %156 = arith.addf %155, %154 : vector<1x128xf32>
    %157 = arith.divf %155, %156 : vector<1x128xf32>
    %158 = vector.extract_strided_slice %144 {offsets = [0, 256], sizes = [1, 128], strides = [1, 1]} : vector<1x384xf32> to vector<1x128xf32>
    %159 = arith.addf %150, %8 : vector<1x128xf32>
    %160 = arith.mulf %157, %159 : vector<1x128xf32>
    %161 = arith.addf %158, %160 : vector<1x128xf32>
    %162 = math.tanh %161 : vector<1x128xf32>
    %163 = vector.extract_strided_slice %144 {offsets = [0, 128], sizes = [1, 128], strides = [1, 1]} : vector<1x384xf32> to vector<1x128xf32>
    %164 = arith.addf %163, %148 : vector<1x128xf32>
    %165 = arith.negf %164 : vector<1x128xf32>
    %166 = math.exp %165 : vector<1x128xf32>
    %cst_72 = arith.constant 1.000000e+00 : f32
    %167 = vector.broadcast %cst_72 : f32 to vector<1x128xf32>
    %168 = arith.addf %167, %166 : vector<1x128xf32>
    %169 = arith.divf %167, %168 : vector<1x128xf32>
    %cst_73 = arith.constant 1.000000e+00 : f32
    %170 = vector.broadcast %cst_73 : f32 to vector<1x128xf32>
    %171 = arith.subf %170, %169 : vector<1x128xf32>
    %172 = arith.mulf %171, %162 : vector<1x128xf32>
    %173 = arith.mulf %169, %141 : vector<1x128xf32>
    %174 = arith.addf %172, %173 : vector<1x128xf32>
    %c5_i32 = arith.constant 5 : i32
    %175 = arith.truncf %174 : vector<1x128xf32> to vector<1x128xbf16>
    %176 = arith.index_cast %c5_i32 : i32 to index
    %c0_74 = arith.constant 0 : index
    %177 = vector.load %arg10[%176, %c0_74] : memref<8x384xf32, #tpu.memory_space<vmem>>, vector<1x384xf32>
    %c0_75 = arith.constant 0 : index
    %c0_76 = arith.constant 0 : index
    %178 = vector.load %arg3[%c0_75, %c0_76] : memref<128x384xbf16, #tpu.memory_space<vmem>>, vector<128x128xbf16>
    %cst_77 = arith.constant dense<0.000000e+00> : vector<1x128xf32>
    %179 = tpu.matmul %175, %178, %cst_77 {dimension_numbers = #tpu.dot_dimension_numbers<[1], [0], [0], [1], [0, 0, 1, 1], [], []>} : vector<1x128xbf16>, vector<128x128xbf16>, vector<1x128xf32> -> vector<1x128xf32>
    %c0_78 = arith.constant 0 : index
    %c128_79 = arith.constant 128 : index
    %180 = vector.load %arg3[%c0_78, %c128_79] : memref<128x384xbf16, #tpu.memory_space<vmem>>, vector<128x128xbf16>
    %cst_80 = arith.constant dense<0.000000e+00> : vector<1x128xf32>
    %181 = tpu.matmul %175, %180, %cst_80 {dimension_numbers = #tpu.dot_dimension_numbers<[1], [0], [0], [1], [0, 0, 1, 1], [], []>} : vector<1x128xbf16>, vector<128x128xbf16>, vector<1x128xf32> -> vector<1x128xf32>
    %c0_81 = arith.constant 0 : index
    %c256_82 = arith.constant 256 : index
    %182 = vector.load %arg3[%c0_81, %c256_82] : memref<128x384xbf16, #tpu.memory_space<vmem>>, vector<128x128xbf16>
    %cst_83 = arith.constant dense<0.000000e+00> : vector<1x128xf32>
    %183 = tpu.matmul %175, %182, %cst_83 {dimension_numbers = #tpu.dot_dimension_numbers<[1], [0], [0], [1], [0, 0, 1, 1], [], []>} : vector<1x128xbf16>, vector<128x128xbf16>, vector<1x128xf32> -> vector<1x128xf32>
    %184 = vector.extract_strided_slice %177 {offsets = [0, 0], sizes = [1, 128], strides = [1, 1]} : vector<1x384xf32> to vector<1x128xf32>
    %185 = arith.addf %184, %179 : vector<1x128xf32>
    %186 = arith.negf %185 : vector<1x128xf32>
    %187 = math.exp %186 : vector<1x128xf32>
    %cst_84 = arith.constant 1.000000e+00 : f32
    %188 = vector.broadcast %cst_84 : f32 to vector<1x128xf32>
    %189 = arith.addf %188, %187 : vector<1x128xf32>
    %190 = arith.divf %188, %189 : vector<1x128xf32>
    %191 = vector.extract_strided_slice %177 {offsets = [0, 256], sizes = [1, 128], strides = [1, 1]} : vector<1x384xf32> to vector<1x128xf32>
    %192 = arith.addf %183, %8 : vector<1x128xf32>
    %193 = arith.mulf %190, %192 : vector<1x128xf32>
    %194 = arith.addf %191, %193 : vector<1x128xf32>
    %195 = math.tanh %194 : vector<1x128xf32>
    %196 = vector.extract_strided_slice %177 {offsets = [0, 128], sizes = [1, 128], strides = [1, 1]} : vector<1x384xf32> to vector<1x128xf32>
    %197 = arith.addf %196, %181 : vector<1x128xf32>
    %198 = arith.negf %197 : vector<1x128xf32>
    %199 = math.exp %198 : vector<1x128xf32>
    %cst_85 = arith.constant 1.000000e+00 : f32
    %200 = vector.broadcast %cst_85 : f32 to vector<1x128xf32>
    %201 = arith.addf %200, %199 : vector<1x128xf32>
    %202 = arith.divf %200, %201 : vector<1x128xf32>
    %cst_86 = arith.constant 1.000000e+00 : f32
    %203 = vector.broadcast %cst_86 : f32 to vector<1x128xf32>
    %204 = arith.subf %203, %202 : vector<1x128xf32>
    %205 = arith.mulf %204, %195 : vector<1x128xf32>
    %206 = arith.mulf %202, %174 : vector<1x128xf32>
    %207 = arith.addf %205, %206 : vector<1x128xf32>
    %c6_i32 = arith.constant 6 : i32
    %208 = arith.truncf %207 : vector<1x128xf32> to vector<1x128xbf16>
    %209 = arith.index_cast %c6_i32 : i32 to index
    %c0_87 = arith.constant 0 : index
    %210 = vector.load %arg10[%209, %c0_87] : memref<8x384xf32, #tpu.memory_space<vmem>>, vector<1x384xf32>
    %c0_88 = arith.constant 0 : index
    %c0_89 = arith.constant 0 : index
    %211 = vector.load %arg3[%c0_88, %c0_89] : memref<128x384xbf16, #tpu.memory_space<vmem>>, vector<128x128xbf16>
    %cst_90 = arith.constant dense<0.000000e+00> : vector<1x128xf32>
    %212 = tpu.matmul %208, %211, %cst_90 {dimension_numbers = #tpu.dot_dimension_numbers<[1], [0], [0], [1], [0, 0, 1, 1], [], []>} : vector<1x128xbf16>, vector<128x128xbf16>, vector<1x128xf32> -> vector<1x128xf32>
    %c0_91 = arith.constant 0 : index
    %c128_92 = arith.constant 128 : index
    %213 = vector.load %arg3[%c0_91, %c128_92] : memref<128x384xbf16, #tpu.memory_space<vmem>>, vector<128x128xbf16>
    %cst_93 = arith.constant dense<0.000000e+00> : vector<1x128xf32>
    %214 = tpu.matmul %208, %213, %cst_93 {dimension_numbers = #tpu.dot_dimension_numbers<[1], [0], [0], [1], [0, 0, 1, 1], [], []>} : vector<1x128xbf16>, vector<128x128xbf16>, vector<1x128xf32> -> vector<1x128xf32>
    %c0_94 = arith.constant 0 : index
    %c256_95 = arith.constant 256 : index
    %215 = vector.load %arg3[%c0_94, %c256_95] : memref<128x384xbf16, #tpu.memory_space<vmem>>, vector<128x128xbf16>
    %cst_96 = arith.constant dense<0.000000e+00> : vector<1x128xf32>
    %216 = tpu.matmul %208, %215, %cst_96 {dimension_numbers = #tpu.dot_dimension_numbers<[1], [0], [0], [1], [0, 0, 1, 1], [], []>} : vector<1x128xbf16>, vector<128x128xbf16>, vector<1x128xf32> -> vector<1x128xf32>
    %217 = vector.extract_strided_slice %210 {offsets = [0, 0], sizes = [1, 128], strides = [1, 1]} : vector<1x384xf32> to vector<1x128xf32>
    %218 = arith.addf %217, %212 : vector<1x128xf32>
    %219 = arith.negf %218 : vector<1x128xf32>
    %220 = math.exp %219 : vector<1x128xf32>
    %cst_97 = arith.constant 1.000000e+00 : f32
    %221 = vector.broadcast %cst_97 : f32 to vector<1x128xf32>
    %222 = arith.addf %221, %220 : vector<1x128xf32>
    %223 = arith.divf %221, %222 : vector<1x128xf32>
    %224 = vector.extract_strided_slice %210 {offsets = [0, 256], sizes = [1, 128], strides = [1, 1]} : vector<1x384xf32> to vector<1x128xf32>
    %225 = arith.addf %216, %8 : vector<1x128xf32>
    %226 = arith.mulf %223, %225 : vector<1x128xf32>
    %227 = arith.addf %224, %226 : vector<1x128xf32>
    %228 = math.tanh %227 : vector<1x128xf32>
    %229 = vector.extract_strided_slice %210 {offsets = [0, 128], sizes = [1, 128], strides = [1, 1]} : vector<1x384xf32> to vector<1x128xf32>
    %230 = arith.addf %229, %214 : vector<1x128xf32>
    %231 = arith.negf %230 : vector<1x128xf32>
    %232 = math.exp %231 : vector<1x128xf32>
    %cst_98 = arith.constant 1.000000e+00 : f32
    %233 = vector.broadcast %cst_98 : f32 to vector<1x128xf32>
    %234 = arith.addf %233, %232 : vector<1x128xf32>
    %235 = arith.divf %233, %234 : vector<1x128xf32>
    %cst_99 = arith.constant 1.000000e+00 : f32
    %236 = vector.broadcast %cst_99 : f32 to vector<1x128xf32>
    %237 = arith.subf %236, %235 : vector<1x128xf32>
    %238 = arith.mulf %237, %228 : vector<1x128xf32>
    %239 = arith.mulf %235, %207 : vector<1x128xf32>
    %240 = arith.addf %238, %239 : vector<1x128xf32>
    %c7_i32 = arith.constant 7 : i32
    %241 = arith.truncf %240 : vector<1x128xf32> to vector<1x128xbf16>
    %242 = arith.index_cast %c7_i32 : i32 to index
    %c0_100 = arith.constant 0 : index
    %243 = vector.load %arg10[%242, %c0_100] : memref<8x384xf32, #tpu.memory_space<vmem>>, vector<1x384xf32>
    %c0_101 = arith.constant 0 : index
    %c0_102 = arith.constant 0 : index
    %244 = vector.load %arg3[%c0_101, %c0_102] : memref<128x384xbf16, #tpu.memory_space<vmem>>, vector<128x128xbf16>
    %cst_103 = arith.constant dense<0.000000e+00> : vector<1x128xf32>
    %245 = tpu.matmul %241, %244, %cst_103 {dimension_numbers = #tpu.dot_dimension_numbers<[1], [0], [0], [1], [0, 0, 1, 1], [], []>} : vector<1x128xbf16>, vector<128x128xbf16>, vector<1x128xf32> -> vector<1x128xf32>
    %c0_104 = arith.constant 0 : index
    %c128_105 = arith.constant 128 : index
    %246 = vector.load %arg3[%c0_104, %c128_105] : memref<128x384xbf16, #tpu.memory_space<vmem>>, vector<128x128xbf16>
    %cst_106 = arith.constant dense<0.000000e+00> : vector<1x128xf32>
    %247 = tpu.matmul %241, %246, %cst_106 {dimension_numbers = #tpu.dot_dimension_numbers<[1], [0], [0], [1], [0, 0, 1, 1], [], []>} : vector<1x128xbf16>, vector<128x128xbf16>, vector<1x128xf32> -> vector<1x128xf32>
    %c0_107 = arith.constant 0 : index
    %c256_108 = arith.constant 256 : index
    %248 = vector.load %arg3[%c0_107, %c256_108] : memref<128x384xbf16, #tpu.memory_space<vmem>>, vector<128x128xbf16>
    %cst_109 = arith.constant dense<0.000000e+00> : vector<1x128xf32>
    %249 = tpu.matmul %241, %248, %cst_109 {dimension_numbers = #tpu.dot_dimension_numbers<[1], [0], [0], [1], [0, 0, 1, 1], [], []>} : vector<1x128xbf16>, vector<128x128xbf16>, vector<1x128xf32> -> vector<1x128xf32>
    %250 = vector.extract_strided_slice %243 {offsets = [0, 0], sizes = [1, 128], strides = [1, 1]} : vector<1x384xf32> to vector<1x128xf32>
    %251 = arith.addf %250, %245 : vector<1x128xf32>
    %252 = arith.negf %251 : vector<1x128xf32>
    %253 = math.exp %252 : vector<1x128xf32>
    %cst_110 = arith.constant 1.000000e+00 : f32
    %254 = vector.broadcast %cst_110 : f32 to vector<1x128xf32>
    %255 = arith.addf %254, %253 : vector<1x128xf32>
    %256 = arith.divf %254, %255 : vector<1x128xf32>
    %257 = vector.extract_strided_slice %243 {offsets = [0, 256], sizes = [1, 128], strides = [1, 1]} : vector<1x384xf32> to vector<1x128xf32>
    %258 = arith.addf %249, %8 : vector<1x128xf32>
    %259 = arith.mulf %256, %258 : vector<1x128xf32>
    %260 = arith.addf %257, %259 : vector<1x128xf32>
    %261 = math.tanh %260 : vector<1x128xf32>
    %262 = vector.extract_strided_slice %243 {offsets = [0, 128], sizes = [1, 128], strides = [1, 1]} : vector<1x384xf32> to vector<1x128xf32>
    %263 = arith.addf %262, %247 : vector<1x128xf32>
    %264 = arith.negf %263 : vector<1x128xf32>
    %265 = math.exp %264 : vector<1x128xf32>
    %cst_111 = arith.constant 1.000000e+00 : f32
    %266 = vector.broadcast %cst_111 : f32 to vector<1x128xf32>
    %267 = arith.addf %266, %265 : vector<1x128xf32>
    %268 = arith.divf %266, %267 : vector<1x128xf32>
    %cst_112 = arith.constant 1.000000e+00 : f32
    %269 = vector.broadcast %cst_112 : f32 to vector<1x128xf32>
    %270 = arith.subf %269, %268 : vector<1x128xf32>
    %271 = arith.mulf %270, %261 : vector<1x128xf32>
    %272 = arith.mulf %268, %240 : vector<1x128xf32>
    %273 = arith.addf %271, %272 : vector<1x128xf32>
    %c8_i32 = arith.constant 8 : i32
    %274 = arith.truncf %273 : vector<1x128xf32> to vector<1x128xbf16>
    %c0_113 = arith.constant 0 : index
    %c0_114 = arith.constant 0 : index
    %275 = vector.load %arg6[%c0_113, %c0_114] : memref<128x128xbf16, #tpu.memory_space<vmem>>, vector<128x128xbf16>
    %cst_115 = arith.constant dense<0.000000e+00> : vector<1x128xf32>
    %276 = tpu.matmul %274, %275, %cst_115 {dimension_numbers = #tpu.dot_dimension_numbers<[1], [0], [0], [1], [0, 0, 1, 1], [], []>} : vector<1x128xbf16>, vector<128x128xbf16>, vector<1x128xf32> -> vector<1x128xf32>
    %c0_116 = arith.constant 0 : index
    %c0_117 = arith.constant 0 : index
    %277 = vector.load %arg7[%c0_116, %c0_117] : memref<1x128xf32, #tpu.memory_space<vmem>>, vector<1x128xf32>
    %278 = arith.addf %276, %277 : vector<1x128xf32>
    %c0_118 = arith.constant 0 : index
    %c0_119 = arith.constant 0 : index
    %279 = vector.load %arg9[%c0_118, %c0_119] : memref<1x128xf32, #tpu.memory_space<vmem>>, vector<1x128xf32>
    tpu.vector_store %arg9[%c0_118, %c0_119], %273 {strides = array<i32>} : memref<1x128xf32, #tpu.memory_space<vmem>>, vector<1x128xf32>,
    %cst_120 = arith.constant dense<0xFF800000> : vector<1xf32>
    %280 = vector.multi_reduction <maximumf>, %278, %cst_120 [1] : vector<1x128xf32> to vector<1xf32>
    %281 = vector.shape_cast %280 : vector<1xf32> to vector<1x1xf32>
    %282 = vector.broadcast %281 : vector<1x1xf32> to vector<1x128xf32>
    %283 = arith.subf %278, %282 : vector<1x128xf32>
    %284 = math.exp %283 : vector<1x128xf32>
    %cst_121 = arith.constant dense<0.000000e+00> : vector<1xf32>
    %285 = vector.multi_reduction <add>, %284, %cst_121 [1] : vector<1x128xf32> to vector<1xf32>
    %286 = vector.shape_cast %285 : vector<1xf32> to vector<1x1xf32>
    %287 = math.log %286 : vector<1x1xf32>
    %288 = arith.addf %287, %281 : vector<1x1xf32>
    %289 = vector.broadcast %288 : vector<1x1xf32> to vector<1x128xf32>
    %290 = arith.subf %278, %289 : vector<1x128xf32>
    %c0_122 = arith.constant 0 : index
    %c0_123 = arith.constant 0 : index
    %291 = vector.load %arg8[%c0_122, %c0_123] : memref<1x128xf32, #tpu.memory_space<vmem>>, vector<1x128xf32>
    tpu.vector_store %arg8[%c0_122, %c0_123], %290 {strides = array<i32>} : memref<1x128xf32, #tpu.memory_space<vmem>>, vector<1x128xf32>,
    return
  }
}

</mosaic_0001>

<bundles_post_ra>
// kernel: tpu_custom_call.1
= control target key start
LH: loop header
LB: loop body
LE: loop exit
PB: predicated region body
PF: predicated region fallthrough
CT: control target
= control target key end

     0   :  { %15 = vsyncpa [#allocation4], 0  ;;  %s3682_s0 = inlined_call_operand.hbm [shape: f32[8,64], index: 0, kind: input, shape index: {}]   ;;  %s3683_s1 = inlined_call_operand.vmem [shape: f32[1,128], index: 1, kind: input, shape index: {}]   ;;  %s3684_s2 = inlined_call_operand.hbm [shape: bf16[64,384], index: 2, kind: input, shape index: {}]   ;;  %s3685_s3 = inlined_call_operand.hbm [shape: bf16[128,384], index: 3, kind: input, shape index: {}]   ;;  %s3686_s4 = inlined_call_operand.vmem [shape: f32[1,384], index: 4, kind: input, shape index: {}]   ;;  %s3687_s5 = inlined_call_operand.vmem [shape: f32[1,128], index: 5, kind: input, shape index: {}]   ;;  %s3688_s6 = inlined_call_operand.hbm [shape: bf16[128,128], index: 6, kind: input, shape index: {}]   ;;  %s3689_s7 = inlined_call_operand.vmem [shape: f32[1,128], index: 7, kind: input, shape index: {}]   ;;  %s3690_s8 = inlined_call_operand.hbm [shape: f32[1,128], index: 8, kind: output, shape index: {0}]   ;;  %s3691_s9 = inlined_call_operand.hbm [shape: f32[1,128], index: 9, kind: output, shape index: {1}]  }
   0x1   :  { %16 = vsyncpa [#allocation7], 0 }
   0x2   :  { %17 = vsyncpa [#allocation10], 0 }
   0x3   :  { %18 = vsyncpa [#allocation5], 0 }
   0x4   :  { %19 = vsyncpa [#allocation13], 0  ;;  %s2928_s30 = smov [#allocation6]   ;;  %s2786_s13 = scalar_lea.hbm %s3684_s2, 1536 }
   0x5   :  { %s37_s10 = sshll.u32 %s2928_s30, 4  ;;  %p2787_p0 = scmp.ne.s32.totalorder %s3684_s2, %s2786_s13  ;;  %s38_s10 = int_to_ptr.vmem [resolvable:$true] %s37_s10 }
   0x6   :  { %p2790_p1 = scmp.lt.u32.totalorder %s2786_s13, %s3684_s2 }
   0x8   :  { %p2792_p2 = pnand %p2790_p1, %p2787_p0 }
   0xa   :  { %2795 = shalt.err (!%p2792_p2)
}
   0xb   :  { %s2796_s18 = scalar_lea.vmem %s38_s10, 1536  ;;  %p2801_p4 = scmp.lt.s32.totalorder %s38_s10, %s38_s10 }
   0xc   :  { %p2797_p3 = scmp.ne.s32.totalorder %s38_s10, %s2796_s18  ;;  %p2802_p5 = scmp.lt.s32.totalorder %s2796_s18, %s2796_s18 }
   0xe   :  { %p2803_p6 = por %p2802_p5, %p2801_p4 }
  0x10   :  { %p2804_p7 = pnand %p2803_p6, %p2797_p3 }
  0x12   :  { %2807 = shalt.err (!%p2804_p7)
}
  0x13   :  { %s2929_s19 = smov 192   ;;  %s2930_s20 = smov 12  }
  0x14   :  { %43 = dma.hbm_to_vmem [thread:$0]  %s3684_s2, 1536, %s38_s10, [#allocation7], %s2929_s19, %s2929_s19, %s2930_s20  }
  0x15   :  { %s2931_s23 = smov [#allocation3]   ;;  %s2932_s25 = smov [#allocation8]  }
  0x16   :  { %s26_s24 = sshll.u32 %s2931_s23, 4  ;;  %s49_s26 = sshll.u32 %s2932_s25, 4  ;;  %s27_s24 = int_to_ptr.vmem [resolvable:$true] %s26_s24  ;;  %s50_s26 = int_to_ptr.vmem [resolvable:$true] %s49_s26 }
  0x17   :  { %s2808_s29 = scalar_lea.hbm %s3682_s0, 128 }
  0x18   :  { %p2809_p8 = scmp.ne.s32.totalorder %s3682_s0, %s2808_s29  ;;  %p2812_p9 = scmp.lt.u32.totalorder %s2808_s29, %s3682_s0 }
  0x1a   :  { %p2814_p10 = pnand %p2812_p9, %p2809_p8 }
  0x1c   :  { %2817 = shalt.err (!%p2814_p10)
}
  0x1d   :  { %s2818_s2 = scalar_lea.vmem %s27_s24, 128  ;;  %p2823_p12 = scmp.lt.s32.totalorder %s27_s24, %s27_s24 }
  0x1e   :  { %p2819_p11 = scmp.ne.s32.totalorder %s27_s24, %s2818_s2  ;;  %p2824_p13 = scmp.lt.s32.totalorder %s2818_s2, %s2818_s2 }
  0x20   :  { %p2825_p0 = por %p2824_p13, %p2823_p12 }
  0x22   :  { %p2826_p1 = pnand %p2825_p0, %p2819_p11 }
  0x24   :  { %2829 = shalt.err (!%p2826_p1)
}
  0x25   :  { %29 = dma.hbm_to_vmem [thread:$0]  %s3682_s0, 128, %s27_s24, [#allocation4]  }
  0x26   :  { %s2830_s17 = scalar_lea.hbm %s3685_s3, 3072 }
  0x27   :  { %p2831_p2 = scmp.ne.s32.totalorder %s3685_s3, %s2830_s17  ;;  %p2834_p3 = scmp.lt.u32.totalorder %s2830_s17, %s3685_s3 }
  0x29   :  { %p2836_p4 = pnand %p2834_p3, %p2831_p2 }
  0x2b   :  { %2839 = shalt.err (!%p2836_p4)
}
  0x2c   :  { %s2840_s25 = scalar_lea.vmem %s50_s26, 3072  ;;  %p2845_p6 = scmp.lt.s32.totalorder %s50_s26, %s50_s26 }
  0x2d   :  { %p2841_p5 = scmp.ne.s32.totalorder %s50_s26, %s2840_s25  ;;  %p2846_p7 = scmp.lt.s32.totalorder %s2840_s25, %s2840_s25 }
  0x2f   :  { %p2847_p8 = por %p2846_p7, %p2845_p6 }
  0x31   :  { %p2848_p9 = pnand %p2847_p8, %p2841_p5 }
  0x33   :  { %2851 = shalt.err (!%p2848_p9)
}
  0x34   :  { %55 = dma.hbm_to_vmem [thread:$0]  %s3685_s3, 3072, %s50_s26, [#allocation7], %s2929_s19, %s2929_s19, %s2930_s20  }
  0x35   :  { %s2933_s27 = smov [#allocation9]   ;;  %s2852_s11 = scalar_lea.hbm %s3688_s6, 1024 }
  0x36   :  { %s65_s28 = sshll.u32 %s2933_s27, 4  ;;  %p2853_p10 = scmp.ne.s32.totalorder %s3688_s6, %s2852_s11  ;;  %s66_s28 = int_to_ptr.vmem [resolvable:$true] %s65_s28 }
  0x37   :  { %p2856_p11 = scmp.lt.u32.totalorder %s2852_s11, %s3688_s6 }
  0x39   :  { %p2858_p12 = pnand %p2856_p11, %p2853_p10 }
  0x3b   :  { %2861 = shalt.err (!%p2858_p12)
}
  0x3c   :  { %s2862_s14 = scalar_lea.vmem %s66_s28, 1024  ;;  %p2867_p0 = scmp.lt.s32.totalorder %s66_s28, %s66_s28 }
  0x3d   :  { %p2863_p13 = scmp.ne.s32.totalorder %s66_s28, %s2862_s14  ;;  %p2868_p1 = scmp.lt.s32.totalorder %s2862_s14, %s2862_s14 }
  0x3f   :  { %p2869_p2 = por %p2868_p1, %p2867_p0 }
  0x41   :  { %p2870_p3 = pnand %p2869_p2, %p2863_p13 }
  0x43   :  { %2873 = shalt.err (!%p2870_p3)
}
  0x44   :  { %s2934_s3 = smov 64   ;;  %s2935_s19 = smov 4  }
  0x45   :  { %71 = dma.hbm_to_vmem [thread:$0]  %s3688_s6, 1024, %s66_s28, [#allocation10], %s2934_s3, %s2934_s3, %s2935_s19  }
  0x46   :  { %2918 = dma.done.wait [#allocation4], 128  }
  0x47   :  { %2919 = vsyncadd [#allocation4], 4294967168 }
  0x48   :  { %2920 = dma.done.wait [#allocation7], 4608  }
  0x49   :  { %2921 = vsyncadd [#allocation7], 4294962688 }
  0x4a   :  { %2922 = dma.done.wait [#allocation10], 1024  }
  0x4b   :  { %2923 = vsyncadd [#allocation10], 4294966272  ;;  %v2936_v0 = vmov 0.0   ;;  %v2937_v1 = vmov 0   ;;  %vm2938_vm0 = vmmov 0   ;;  %v87_v13 = vld [vmem:[#allocation3] sm:$0xff]  ;;  %v107_v42 = vlaneseq }
  0x4c   :  { %2116 = vmatprep.subr.bf16.mxu0 %v2936_v0  ;;  %222 = vmatprep.mubr.bf16.mxu1 %v2937_v1  ;;  %v2629_v2 = vld [vmem:[#allocation6 + $0x4] ss:$12 sps:$4 sm:$0xff]   ;;  %v2631_v3 = vld [vmem:[#allocation6] ss:$12 sps:$4 sm:$0xff]   ;;  %v2632_v4 = vld [vmem:[#allocation6 + $0x1c] ss:$12 sps:$4 sm:$0xff]   ;;  %v88_v15 = vpack.c.bf16 %v87_v13, %v87_v13 }
  0x4d   :  { %2132 = vmatprep.mubr.msk.bf16.mxu0 %vm2938_vm0, %v2936_v0  ;;  %190 = vmatprep.subr.bf16.mxu1 %v2629_v2  ;;  %v2634_v5 = vld [vmem:[#allocation6 + $0x18] ss:$12 sps:$4 sm:$0xff]   ;;  %v3048_v6 = vld [vmem:[#allocation8] ss:$12 sps:$4 sm:$0xff]   ;;  %v2638_v9 = vld [vmem:[#allocation6 + $0x30] ss:$12 sps:$4 sm:$0xff]  }
  0x4e   :  { %191 = vmatpush1.bf16.msra.mxu1 %v2631_v3  ;;  %v2636_v7 = vld [vmem:[#allocation6 + $0x34] ss:$12 sps:$4 sm:$0xff]   ;;  %2117 = vmatpush3.bf16.msra.mxu0 %v3048_v6  ;;  %v3051_v8 = vld [vmem:[#allocation8 + $0x18] ss:$12 sps:$4 sm:$0xff]   ;;  %v3055_v11 = vld [vmem:[#allocation8 + $0x30] ss:$12 sps:$4 sm:$0xff]  }
  0x4f   :  { %192 = vmatprep.subr.bf16.mxu1 %v2632_v4  ;;  %2118 = vmatprep.subr.bf16.mxu0 %v2936_v0  ;;  %v2640_v10 = vld [vmem:[#allocation6 + $0x4c] ss:$12 sps:$4 sm:$0xff]   ;;  %v2642_v12 = vld [vmem:[#allocation6 + $0x48] ss:$12 sps:$4 sm:$0xff]   ;;  %vm186_vm1 = vcmask 523264   ;;  %v108_v43 = vshrl.u32 %v107_v42, 7 }
  0x50   :  { %v3059_v14 = vld [vmem:[#allocation8 + $0x48] ss:$12 sps:$4 sm:$0xff]   ;;  %v3064_v17 = vld [vmem:[#allocation8 + $0x60] ss:$12 sps:$4 sm:$0xff]   ;;  %v3072_v19 = vld [vmem:[#allocation8 + $0x78] ss:$12 sps:$4 sm:$0xff]  }
  0x51   :  { %v2644_v16 = vld [vmem:[#allocation6 + $0x8] ss:$12 sps:$4 sm:$0xff]   ;;  %v2646_v18 = vld [vmem:[#allocation6 + $0x20] ss:$12 sps:$4 sm:$0xff]   ;;  %v2648_v20 = vld [vmem:[#allocation6 + $0x38] ss:$12 sps:$4 sm:$0xff]  }
  0x52   :  { %193 = vmatpush1.bf16.msra.mxu1 %v2634_v5  ;;  %2119 = vmatpush3.bf16.msra.mxu0 %v3051_v8  ;;  %v3077_v21 = vld [vmem:[#allocation8 + $0x90] ss:$12 sps:$4 sm:$0xff]   ;;  %v3081_v23 = vld [vmem:[#allocation8 + $0xa8] ss:$12 sps:$4 sm:$0xff]   ;;  %v3087_v24 = vld [vmem:[%s3683_s1] sm:$0x1] }
  0x53   :  { %194 = vmatprep.subr.bf16.mxu1 %v2636_v7  ;;  %2120 = vmatprep.subr.bf16.mxu0 %v2936_v0  ;;  %v2650_v22 = vld [vmem:[#allocation6 + $0x50] ss:$12 sps:$4 sm:$0xff]   ;;  %v276_v26 = vpack.c.bf16 %v3087_v24, %v3087_v24  ;;  %v3096_v27 = vld [vmem:[#allocation8 + $0x8] ss:$12 sps:$4 sm:$0xff]   ;;  %v3103_v29 = vld [vmem:[#allocation8 + $0x20] ss:$12 sps:$4 sm:$0xff]  }
  0x54   :  { %v3090_v25 = vld [vmem:[#allocation8 + $0x4] ss:$12 sps:$4 sm:$0xff]   ;;  %v3100_v28 = vld [vmem:[#allocation8 + $0x1c] ss:$12 sps:$4 sm:$0xff]   ;;  %v3113_v30 = vld [vmem:[#allocation8 + $0x34] ss:$12 sps:$4 sm:$0xff]  }
  0x55   :  { %v3117_v31 = vld [vmem:[#allocation8 + $0x38] ss:$12 sps:$4 sm:$0xff]   ;;  %v3125_v33 = vld [vmem:[#allocation8 + $0x50] ss:$12 sps:$4 sm:$0xff]   ;;  %v3133_v35 = vld [vmem:[#allocation8 + $0x68] ss:$12 sps:$4 sm:$0xff]  }
  0x56   :  { %195 = vmatpush1.bf16.msra.mxu1 %v2638_v9  ;;  %2121 = vmatpush3.bf16.msra.mxu0 %v3055_v11  ;;  %v3121_v32 = vld [vmem:[#allocation8 + $0x4c] ss:$12 sps:$4 sm:$0xff]   ;;  %v3129_v34 = vld [vmem:[#allocation8 + $0x64] ss:$12 sps:$4 sm:$0xff]   ;;  %v3137_v36 = vld [vmem:[#allocation8 + $0x7c] ss:$12 sps:$4 sm:$0xff]  }
  0x57   :  { %196 = vmatprep.subr.bf16.mxu1 %v2640_v10  ;;  %2122 = vmatprep.subr.bf16.mxu0 %v2936_v0  ;;  %v3141_v37 = vld [vmem:[#allocation8 + $0x80] ss:$12 sps:$4 sm:$0xff]   ;;  %v3149_v39 = vld [vmem:[#allocation8 + $0x98] ss:$12 sps:$4 sm:$0xff]   ;;  %v3157_v41 = vld [vmem:[#allocation8 + $0xb0] ss:$12 sps:$4 sm:$0xff]  }
  0x58   :  { %v3145_v38 = vld [vmem:[#allocation8 + $0x94] ss:$12 sps:$4 sm:$0xff]   ;;  %v3153_v40 = vld [vmem:[#allocation8 + $0xac] ss:$12 sps:$4 sm:$0xff]   ;;  %v109_v44 = vsub.s32 0, %v108_v43  ;;  %v113_v46 = vsub.s32 1, %v108_v43 }
  0x59   :  { %v105_v45 = vld [vmem:[%s3686_s4] sm:$0x7]  ;;  %v117_v55 = vsub.s32 2, %v108_v43  ;;  %vm1766_vm2 = vcmask 1040384   ;;  %s2939_s23 = smov [#allocation12]  }
  0x5a   :  { %197 = vmatpush1.bf16.msra.mxu1 %v2642_v12  ;;  %2123 = vmatpush3.bf16.msra.mxu0 %v3059_v14  ;;  %v110_v47 = vrot.slane %v105_v45, %v109_v44  ;;  %v114_v48 = vrot.slane %v105_v45, %v113_v46  ;;  %v3206_v13 = vld [vmem:[%s3687_s5] sm:$0x1]  ;;  %s1797_s25 = sshll.u32 %s2939_s23, 4  ;;  %s1798_s25 = int_to_ptr.vmem [resolvable:$true] %s1797_s25 }
  0x5b   :  { %2104 = vmatprep.subr.bf16.mxu1 %v2936_v0  ;;  %2124 = vmatprep.subr.bf16.mxu0 %v2936_v0  ;;  %v118_v56 = vrot.slane %v105_v45, %v117_v55  ;;  %s2874_s0 = scalar_lea.vmem %s1798_s25, 16  ;;  %p2879_p5 = scmp.lt.s32.totalorder %s1798_s25, %s1798_s25 }
  0x5c   :  { %p2875_p4 = scmp.ne.s32.totalorder %s1798_s25, %s2874_s0 }
  0x5d   :  { %1824 = vmatmul.mubr.msk.bf16.vlgmr.msra.gmra.mrb[0].mxu1 %vm186_vm1, %v88_v15 }
  0x5e   :  { %2105 = vmatpush3.bf16.msra.mxu1 %v2644_v16  ;;  %2112 = vmatprep.mubr.msk.bf16.mxu1 %vm2938_vm0, %v2936_v0 }
  0x5f   :  { %2106 = vmatprep.subr.bf16.mxu1 %v2936_v0  ;;  %2125 = vmatpush3.bf16.msra.mxu0 %v3064_v17 }
  0x60   :  { %2126 = vmatprep.subr.bf16.mxu0 %v2936_v0 }
  0x62   :  { %2107 = vmatpush3.bf16.msra.mxu1 %v2646_v18 }
  0x63   :  { %2108 = vmatprep.subr.bf16.mxu1 %v2936_v0  ;;  %2127 = vmatpush3.bf16.msra.mxu0 %v3072_v19 }
  0x64   :  { %2128 = vmatprep.subr.bf16.mxu0 %v2936_v0 }
  0x66   :  { %2109 = vmatpush3.bf16.msra.mxu1 %v2648_v20 }
  0x67   :  { %2110 = vmatprep.subr.bf16.mxu1 %v2936_v0  ;;  %2129 = vmatpush3.bf16.msra.mxu0 %v3077_v21 }
  0x68   :  { %2130 = vmatprep.subr.bf16.mxu0 %v2936_v0 }
  0x6a   :  { %2111 = vmatpush3.bf16.msra.mxu1 %v2650_v22 }
  0x6b   :  { %2136 = vmatprep.subr.bf16.mxu1 %v2936_v0  ;;  %2131 = vmatpush3.bf16.msra.mxu0 %v3081_v23 }
  0x6c   :  { %2156 = vmatprep.subr.bf16.mxu0 %v2936_v0 }
  0x6d   :  { %2113 = vmatmul.mubr.msk.bf16.vlgmr.msra.gmra.mrb[4].mxu1 %vm186_vm1, %v88_v15 }
  0x6e   :  { %2137 = vmatpush3.bf16.msra.mxu1 %v3090_v25  ;;  %2152 = vmatprep.mubr.msk.bf16.mxu1 %vm2938_vm0, %v2936_v0 }
  0x6f   :  { %2138 = vmatprep.subr.bf16.mxu1 %v2936_v0  ;;  %2133 = vmatmul.mubr.bf16.vlgmr.msra.gmra.mrb[0].mxu0 %v276_v26 }
  0x70   :  { %2157 = vmatpush3.bf16.msra.mxu0 %v3096_v27  ;;  %2172 = vmatprep.mubr.msk.bf16.mxu0 %vm2938_vm0, %v2936_v0 }
  0x71   :  { %2158 = vmatprep.subr.bf16.mxu0 %v2936_v0 }
  0x72   :  { %2139 = vmatpush3.bf16.msra.mxu1 %v3100_v28 }
  0x73   :  { %2140 = vmatprep.subr.bf16.mxu1 %v2936_v0 }
  0x74   :  { %2159 = vmatpush3.bf16.msra.mxu0 %v3103_v29 }
  0x75   :  { %2160 = vmatprep.subr.bf16.mxu0 %v2936_v0 }
  0x76   :  { %2141 = vmatpush3.bf16.msra.mxu1 %v3113_v30 }
  0x77   :  { %2142 = vmatprep.subr.bf16.mxu1 %v2936_v0 }
  0x78   :  { %2161 = vmatpush3.bf16.msra.mxu0 %v3117_v31 }
  0x79   :  { %2162 = vmatprep.subr.bf16.mxu0 %v2936_v0 }
  0x7a   :  { %2143 = vmatpush3.bf16.msra.mxu1 %v3121_v32 }
  0x7b   :  { %2144 = vmatprep.subr.bf16.mxu1 %v2936_v0 }
  0x7c   :  { %2163 = vmatpush3.bf16.msra.mxu0 %v3125_v33 }
  0x7d   :  { %2164 = vmatprep.subr.bf16.mxu0 %v2936_v0 }
  0x7e   :  { %2145 = vmatpush3.bf16.msra.mxu1 %v3129_v34 }
  0x7f   :  { %2146 = vmatprep.subr.bf16.mxu1 %v2936_v0 }
  0x80   :  { %2165 = vmatpush3.bf16.msra.mxu0 %v3133_v35 }
  0x81   :  { %2166 = vmatprep.subr.bf16.mxu0 %v2936_v0 }
  0x82   :  { %2147 = vmatpush3.bf16.msra.mxu1 %v3137_v36 }
  0x83   :  { %2148 = vmatprep.subr.bf16.mxu1 %v2936_v0 }
  0x84   :  { %2167 = vmatpush3.bf16.msra.mxu0 %v3141_v37 }
  0x85   :  { %2168 = vmatprep.subr.bf16.mxu0 %v2936_v0 }
  0x86   :  { %2149 = vmatpush3.bf16.msra.mxu1 %v3145_v38 }
  0x87   :  { %2150 = vmatprep.subr.bf16.mxu1 %v2936_v0 }
  0x88   :  { %2169 = vmatpush3.bf16.msra.mxu0 %v3149_v39 }
  0x89   :  { %2170 = vmatprep.subr.bf16.mxu0 %v2936_v0 }
  0x8a   :  { %2151 = vmatpush3.bf16.msra.mxu1 %v3153_v40 }
  0x8b   :  { %2176 = vmatprep.subr.bf16.mxu1 %v2936_v0 }
  0x8c   :  { %2171 = vmatpush3.bf16.msra.mxu0 %v3157_v41 }
  0x8d   :  { %2153 = vmatmul.mubr.bf16.vlgmr.msra.gmra.mrb[8].mxu1 %v276_v26  ;;  %2196 = vmatprep.subr.bf16.mxu0 %v2936_v0 }
  0x8e   :  { %2177 = vmatpush3.bf16.msra.mxu1 %v3048_v6  ;;  %2192 = vmatprep.mubr.msk.bf16.mxu1 %vm2938_vm0, %v2936_v0 }
  0x8f   :  { %2173 = vmatmul.mubr.bf16.vlgmr.msra.gmra.mrb[4].mxu0 %v276_v26  ;;  %2178 = vmatprep.subr.bf16.mxu1 %v2936_v0 }
  0x90   :  { %2197 = vmatpush3.bf16.msra.mxu0 %v3090_v25  ;;  %2212 = vmatprep.mubr.msk.bf16.mxu0 %vm2938_vm0, %v2936_v0 }
  0x91   :  { %2198 = vmatprep.subr.bf16.mxu0 %v2936_v0 }
  0x92   :  { %2179 = vmatpush3.bf16.msra.mxu1 %v3051_v8 }
  0x93   :  { %2180 = vmatprep.subr.bf16.mxu1 %v2936_v0 }
  0x94   :  { %2199 = vmatpush3.bf16.msra.mxu0 %v3100_v28 }
  0x95   :  { %2200 = vmatprep.subr.bf16.mxu0 %v2936_v0 }
  0x96   :  { %2181 = vmatpush3.bf16.msra.mxu1 %v3055_v11 }
  0x97   :  { %2182 = vmatprep.subr.bf16.mxu1 %v2936_v0 }
  0x98   :  { %2201 = vmatpush3.bf16.msra.mxu0 %v3113_v30 }
  0x99   :  { %2202 = vmatprep.subr.bf16.mxu0 %v2936_v0 }
  0x9a   :  { %2183 = vmatpush3.bf16.msra.mxu1 %v3059_v14 }
  0x9b   :  { %2184 = vmatprep.subr.bf16.mxu1 %v2936_v0 }
  0x9c   :  { %2203 = vmatpush3.bf16.msra.mxu0 %v3121_v32 }
  0x9d   :  { %2204 = vmatprep.subr.bf16.mxu0 %v2936_v0 }
  0x9e   :  { %2185 = vmatpush3.bf16.msra.mxu1 %v3064_v17 }
  0x9f   :  { %2186 = vmatprep.subr.bf16.mxu1 %v2936_v0 }
  0xa0   :  { %2205 = vmatpush3.bf16.msra.mxu0 %v3129_v34 }
  0xa1   :  { %2206 = vmatprep.subr.bf16.mxu0 %v2936_v0 }
  0xa2   :  { %2187 = vmatpush3.bf16.msra.mxu1 %v3072_v19 }
  0xa3   :  { %2188 = vmatprep.subr.bf16.mxu1 %v2936_v0 }
  0xa4   :  { %2207 = vmatpush3.bf16.msra.mxu0 %v3137_v36 }
  0xa5   :  { %2208 = vmatprep.subr.bf16.mxu0 %v2936_v0 }
  0xa6   :  { %2189 = vmatpush3.bf16.msra.mxu1 %v3077_v21 }
  0xa7   :  { %2190 = vmatprep.subr.bf16.mxu1 %v2936_v0 }
  0xa8   :  { %2209 = vmatpush3.bf16.msra.mxu0 %v3145_v38 }
  0xa9   :  { %2210 = vmatprep.subr.bf16.mxu0 %v2936_v0 }
  0xaa   :  { %2191 = vmatpush3.bf16.msra.mxu1 %v3081_v23 }
  0xab   :  { %2216 = vmatprep.subr.bf16.mxu1 %v2936_v0 }
  0xac   :  { %2211 = vmatpush3.bf16.msra.mxu0 %v3153_v40 }
  0xad   :  { %2236 = vmatprep.subr.bf16.mxu0 %v2936_v0 }
 0x130   :  { %v224_v49 = vpop.f32.mrb[0].mxu1 }
 0x131   :  { %v225_v50 = vadd.f32 %v224_v49, %v110_v47  ;;  %v226_v51 = vpop.f32.mrb[1].mxu1 }
 0x132   :  { %v227_v52 = vadd.f32 %v226_v51, %v114_v48  ;;  %v228_v53 = vpop.f32.mrb[2].mxu1 }
 0x133   :  { %271 = vst [vmem:[#allocation2] sm:$0xff] %v225_v50  ;;  %v229_v54 = vpop.f32.mrb[3].mxu1 }
 0x134   :  { %272 = vst [vmem:[#allocation2 + $0x8] sm:$0xff] %v227_v52 }
 0x140   :  { %v265_v57 = vpop.f32.mrb[4].mxu1 }
 0x141   :  { %v266_v58 = vadd.f32 %v265_v57, %v118_v56  ;;  %v2114_v59 = vpop.f32.mrb[5].mxu1 }
 0x142   :  { %v268_v60 = vpop.f32.mrb[6].mxu1  ;;  %v376_v61 = vpop.f32.mrb[0].mxu0 }
 0x143   :  { %273 = vst [vmem:[#allocation2 + $0x10] sm:$0xff] %v266_v58  ;;  %v2115_v62 = vpop.f32.mrb[7].mxu1  ;;  %v2134_v63 = vpop.f32.mrb[1].mxu0 }
 0x144   :  { %v379_v1 = vpop.f32.mrb[2].mxu0 }
 0x145   :  { %v2135_v2 = vpop.f32.mrb[3].mxu0 }
 0x14a   :  { %v277_v3 = vld [vmem:[#allocation2] ss:$8 sm:$0x7] }
 0x14b   :  { %v502_v4 = vadd.f32 %v376_v61, %v277_v3  ;;  %v603_v10 = vrot.slane %v277_v3, 1  ;;  %v599_v48 = vrot.slane %v277_v3, 2 }
 0x14d   :  { %v1842_v5 = vmul.f32 -1.442695, %v502_v4 }
 0x14f   :  { %2677 = vpow2.f32 %v1842_v5 }
 0x159   :  { %v2678_v7 = vpop.eup %2677 }
 0x15a   :  { %v506_v9 = vadd.f32 1.0, %v2678_v7 }
 0x15c   :  { %2679 = vrcp.f32 %v506_v9 }
 0x160   :  { %v480_v12 = vpop.f32.mrb[8].mxu1 }
 0x161   :  { %v605_v15 = vadd.f32 %v603_v10, %v480_v12  ;;  %v2154_v16 = vpop.f32.mrb[9].mxu1 }
 0x162   :  { %v483_v18 = vpop.f32.mrb[10].mxu1  ;;  %v591_v20 = vpop.f32.mrb[4].mxu0 }
 0x163   :  { %v1851_v22 = vmul.f32 -1.442695, %v605_v15  ;;  %v2155_v26 = vpop.f32.mrb[11].mxu1  ;;  %v592_v42 = vadd.f32 %v591_v20, %v3206_v13  ;;  %v2174_v43 = vpop.f32.mrb[5].mxu0 }
 0x164   :  { %v594_v44 = vpop.f32.mrb[6].mxu0 }
 0x165   :  { %2681 = vpow2.f32 %v1851_v22  ;;  %v2175_v45 = vpop.f32.mrb[7].mxu0 }
 0x166   :  { %v2680_v46 = vpop.eup %2679 }
 0x167   :  { %v597_v47 = vmul.f32 %v2680_v46, %v592_v42 }
 0x169   :  { %v601_v51 = vadd.f32 %v599_v48, %v597_v47 }
 0x16f   :  { %v2682_v49 = vpop.eup %2681 }
 0x170   :  { %v609_v50 = vadd.f32 1.0, %v2682_v49 }
 0x172   :  { %2683 = vrcp.f32 %v609_v50 }
 0x173   :  { %2685 = vtanh.f32 %v601_v51 }
 0x17c   :  { %v2684_v52 = vpop.eup %2683 }
 0x17d   :  { %v612_v53 = vsub.f32 1.0, %v2684_v52  ;;  %v2686_v54 = vpop.eup %2685  ;;  %v614_v56 = vmul.f32 %v2684_v52, %v3087_v24  ;;  %v618_v24 = vld [vmem:[#allocation2 + $0x1] ss:$8 sm:$0x7] }
 0x17e   :  { %v752_v7 = vrot.slane %v618_v24, 1  ;;  %v748_v44 = vrot.slane %v618_v24, 2 }
 0x17f   :  { %v613_v55 = vmul.f32 %v2686_v54, %v612_v53 }
 0x181   :  { %v3210_v57 = vadd.f32 %v614_v56, %v613_v55  ;;  %v767_v55 = vld [vmem:[#allocation2 + $0x2] ss:$8 sm:$0x7] }
 0x183   :  { %v616_v58 = vpack.c.bf16 %v3210_v57, %v3210_v57 }
 0x185   :  { %2193 = vmatmul.mubr.bf16.vlgmr.msra.gmra.mrb[12].mxu1 %v616_v58  ;;  %2213 = vmatmul.mubr.bf16.vlgmr.msra.gmra.mrb[8].mxu0 %v616_v58 }
 0x186   :  { %2217 = vmatpush3.bf16.msra.mxu1 %v3096_v27  ;;  %2232 = vmatprep.mubr.msk.bf16.mxu1 %vm2938_vm0, %v2936_v0 }
 0x187   :  { %2218 = vmatprep.subr.bf16.mxu1 %v2936_v0  ;;  %2237 = vmatpush3.bf16.msra.mxu0 %v3048_v6 }
 0x188   :  { %2238 = vmatprep.subr.bf16.mxu0 %v2936_v0  ;;  %2252 = vmatprep.mubr.msk.bf16.mxu0 %vm2938_vm0, %v2936_v0 }
 0x18a   :  { %2219 = vmatpush3.bf16.msra.mxu1 %v3103_v29 }
 0x18b   :  { %2220 = vmatprep.subr.bf16.mxu1 %v2936_v0  ;;  %2239 = vmatpush3.bf16.msra.mxu0 %v3051_v8 }
 0x18c   :  { %2240 = vmatprep.subr.bf16.mxu0 %v2936_v0 }
 0x18e   :  { %2221 = vmatpush3.bf16.msra.mxu1 %v3117_v31 }
 0x18f   :  { %2222 = vmatprep.subr.bf16.mxu1 %v2936_v0  ;;  %2241 = vmatpush3.bf16.msra.mxu0 %v3055_v11 }
 0x190   :  { %2242 = vmatprep.subr.bf16.mxu0 %v2936_v0 }
 0x192   :  { %2223 = vmatpush3.bf16.msra.mxu1 %v3125_v33 }
 0x193   :  { %2224 = vmatprep.subr.bf16.mxu1 %v2936_v0  ;;  %2243 = vmatpush3.bf16.msra.mxu0 %v3059_v14 }
 0x194   :  { %2244 = vmatprep.subr.bf16.mxu0 %v2936_v0 }
 0x196   :  { %2225 = vmatpush3.bf16.msra.mxu1 %v3133_v35 }
 0x197   :  { %2226 = vmatprep.subr.bf16.mxu1 %v2936_v0  ;;  %2245 = vmatpush3.bf16.msra.mxu0 %v3064_v17 }
 0x198   :  { %2246 = vmatprep.subr.bf16.mxu0 %v2936_v0 }
 0x19a   :  { %2227 = vmatpush3.bf16.msra.mxu1 %v3141_v37 }
 0x19b   :  { %2228 = vmatprep.subr.bf16.mxu1 %v2936_v0  ;;  %2247 = vmatpush3.bf16.msra.mxu0 %v3072_v19 }
 0x19c   :  { %2248 = vmatprep.subr.bf16.mxu0 %v2936_v0 }
 0x19e   :  { %2229 = vmatpush3.bf16.msra.mxu1 %v3149_v39 }
 0x19f   :  { %2230 = vmatprep.subr.bf16.mxu1 %v2936_v0  ;;  %2249 = vmatpush3.bf16.msra.mxu0 %v3077_v21 }
 0x1a0   :  { %2250 = vmatprep.subr.bf16.mxu0 %v2936_v0 }
 0x1a2   :  { %2231 = vmatpush3.bf16.msra.mxu1 %v3157_v41 }
 0x1a3   :  { %2256 = vmatprep.subr.bf16.mxu1 %v2936_v0  ;;  %2251 = vmatpush3.bf16.msra.mxu0 %v3081_v23 }
 0x1a4   :  { %2276 = vmatprep.subr.bf16.mxu0 %v2936_v0 }
 0x1a5   :  { %2233 = vmatmul.mubr.bf16.vlgmr.msra.gmra.mrb[16].mxu1 %v616_v58 }
 0x1a6   :  { %2257 = vmatpush3.bf16.msra.mxu1 %v3090_v25  ;;  %2272 = vmatprep.mubr.msk.bf16.mxu1 %vm2938_vm0, %v2936_v0 }
 0x1a7   :  { %2258 = vmatprep.subr.bf16.mxu1 %v2936_v0 }
 0x1aa   :  { %2259 = vmatpush3.bf16.msra.mxu1 %v3100_v28 }
 0x1ab   :  { %2260 = vmatprep.subr.bf16.mxu1 %v2936_v0 }
 0x1ae   :  { %2261 = vmatpush3.bf16.msra.mxu1 %v3113_v30 }
 0x1af   :  { %2262 = vmatprep.subr.bf16.mxu1 %v2936_v0 }
 0x1b2   :  { %2263 = vmatpush3.bf16.msra.mxu1 %v3121_v32 }
 0x1b3   :  { %2264 = vmatprep.subr.bf16.mxu1 %v2936_v0 }
 0x1b6   :  { %2265 = vmatpush3.bf16.msra.mxu1 %v3129_v34 }
 0x1b7   :  { %2266 = vmatprep.subr.bf16.mxu1 %v2936_v0 }
 0x1ba   :  { %2267 = vmatpush3.bf16.msra.mxu1 %v3137_v36 }
 0x1bb   :  { %2268 = vmatprep.subr.bf16.mxu1 %v2936_v0 }
 0x1be   :  { %2269 = vmatpush3.bf16.msra.mxu1 %v3145_v38 }
 0x1bf   :  { %2270 = vmatprep.subr.bf16.mxu1 %v2936_v0 }
 0x1c2   :  { %2271 = vmatpush3.bf16.msra.mxu1 %v3153_v40 }
 0x1c3   :  { %2296 = vmatprep.subr.bf16.mxu1 %v2936_v0 }
 0x258   :  { %v653_v59 = vpop.f32.mrb[12].mxu1  ;;  %v693_v60 = vpop.f32.mrb[8].mxu0 }
 0x259   :  { %v699_v61 = vadd.f32 %v653_v59, %v618_v24  ;;  %v2194_v62 = vpop.f32.mrb[13].mxu1  ;;  %v2214_v63 = vpop.f32.mrb[9].mxu0  ;;  %v754_v9 = vadd.f32 %v752_v7, %v693_v60 }
 0x25a   :  { %v656_v1 = vpop.f32.mrb[14].mxu1  ;;  %v696_v2 = vpop.f32.mrb[10].mxu0 }
 0x25b   :  { %v1852_v3 = vmul.f32 -1.442695, %v699_v61  ;;  %v2195_v4 = vpop.f32.mrb[15].mxu1  ;;  %v2215_v5 = vpop.f32.mrb[11].mxu0  ;;  %v1853_v10 = vmul.f32 -1.442695, %v754_v9 }
 0x25c   :  { %v901_v2 = vrot.slane %v767_v55, 1 }
 0x25d   :  { %2687 = vpow2.f32 %v1852_v3 }
 0x25e   :  { %2689 = vpow2.f32 %v1853_v10 }
 0x267   :  { %v2688_v12 = vpop.eup %2687 }
 0x268   :  { %v703_v15 = vadd.f32 1.0, %v2688_v12  ;;  %v2690_v16 = vpop.eup %2689 }
 0x269   :  { %v758_v18 = vadd.f32 1.0, %v2690_v16 }
 0x26a   :  { %2691 = vrcp.f32 %v703_v15 }
 0x26b   :  { %2693 = vrcp.f32 %v758_v18 }
 0x274   :  { %v2692_v42 = vpop.eup %2691 }
 0x275   :  { %v2694_v48 = vpop.eup %2693 }
 0x276   :  { %v761_v49 = vsub.f32 1.0, %v2694_v48  ;;  %v763_v52 = vmul.f32 %v2694_v48, %v3210_v57 }
 0x278   :  { %v740_v20 = vpop.f32.mrb[16].mxu1 }
 0x279   :  { %v741_v22 = vadd.f32 %v740_v20, %v3206_v13  ;;  %v2234_v26 = vpop.f32.mrb[17].mxu1 }
 0x27a   :  { %v743_v43 = vpop.f32.mrb[18].mxu1 }
 0x27b   :  { %v746_v45 = vmul.f32 %v2692_v42, %v741_v22  ;;  %v2235_v46 = vpop.f32.mrb[19].mxu1  ;;  %v897_v22 = vrot.slane %v767_v55, 2 }
 0x27d   :  { %v750_v47 = vadd.f32 %v748_v44, %v746_v45 }
 0x27f   :  { %2695 = vtanh.f32 %v750_v47 }
 0x289   :  { %v2696_v50 = vpop.eup %2695 }
 0x28a   :  { %v762_v51 = vmul.f32 %v2696_v50, %v761_v49 }
 0x28c   :  { %v3270_v53 = vadd.f32 %v763_v52, %v762_v51 }
 0x28e   :  { %v765_v54 = vpack.c.bf16 %v3270_v53, %v3270_v53 }
 0x290   :  { %2253 = vmatmul.mubr.bf16.vlgmr.msra.gmra.mrb[12].mxu0 %v765_v54  ;;  %2273 = vmatmul.mubr.bf16.vlgmr.msra.gmra.mrb[20].mxu1 %v765_v54 }
 0x291   :  { %2277 = vmatpush3.bf16.msra.mxu0 %v3096_v27  ;;  %2292 = vmatprep.mubr.msk.bf16.mxu0 %vm2938_vm0, %v2936_v0 }
 0x292   :  { %2278 = vmatprep.subr.bf16.mxu0 %v2936_v0  ;;  %2297 = vmatpush3.bf16.msra.mxu1 %v3048_v6 }
 0x293   :  { %2298 = vmatprep.subr.bf16.mxu1 %v2936_v0  ;;  %2312 = vmatprep.mubr.msk.bf16.mxu1 %vm2938_vm0, %v2936_v0 }
 0x295   :  { %2279 = vmatpush3.bf16.msra.mxu0 %v3103_v29 }
 0x296   :  { %2280 = vmatprep.subr.bf16.mxu0 %v2936_v0  ;;  %2299 = vmatpush3.bf16.msra.mxu1 %v3051_v8 }
 0x297   :  { %2300 = vmatprep.subr.bf16.mxu1 %v2936_v0 }
 0x299   :  { %2281 = vmatpush3.bf16.msra.mxu0 %v3117_v31 }
 0x29a   :  { %2282 = vmatprep.subr.bf16.mxu0 %v2936_v0  ;;  %2301 = vmatpush3.bf16.msra.mxu1 %v3055_v11 }
 0x29b   :  { %2302 = vmatprep.subr.bf16.mxu1 %v2936_v0 }
 0x29d   :  { %2283 = vmatpush3.bf16.msra.mxu0 %v3125_v33 }
 0x29e   :  { %2284 = vmatprep.subr.bf16.mxu0 %v2936_v0  ;;  %2303 = vmatpush3.bf16.msra.mxu1 %v3059_v14 }
 0x29f   :  { %2304 = vmatprep.subr.bf16.mxu1 %v2936_v0 }
 0x2a1   :  { %2285 = vmatpush3.bf16.msra.mxu0 %v3133_v35 }
 0x2a2   :  { %2286 = vmatprep.subr.bf16.mxu0 %v2936_v0  ;;  %2305 = vmatpush3.bf16.msra.mxu1 %v3064_v17 }
 0x2a3   :  { %2306 = vmatprep.subr.bf16.mxu1 %v2936_v0 }
 0x2a5   :  { %2287 = vmatpush3.bf16.msra.mxu0 %v3141_v37 }
 0x2a6   :  { %2288 = vmatprep.subr.bf16.mxu0 %v2936_v0  ;;  %2307 = vmatpush3.bf16.msra.mxu1 %v3072_v19 }
 0x2a7   :  { %2308 = vmatprep.subr.bf16.mxu1 %v2936_v0 }
 0x2a9   :  { %2289 = vmatpush3.bf16.msra.mxu0 %v3149_v39 }
 0x2aa   :  { %2290 = vmatprep.subr.bf16.mxu0 %v2936_v0  ;;  %2309 = vmatpush3.bf16.msra.mxu1 %v3077_v21 }
 0x2ab   :  { %2310 = vmatprep.subr.bf16.mxu1 %v2936_v0 }
 0x2ad   :  { %2291 = vmatpush3.bf16.msra.mxu0 %v3157_v41 }
 0x2ae   :  { %2316 = vmatprep.subr.bf16.mxu0 %v2936_v0  ;;  %2311 = vmatpush3.bf16.msra.mxu1 %v3081_v23 }
 0x2af   :  { %2336 = vmatprep.subr.bf16.mxu1 %v2936_v0 }
 0x2b0   :  { %2293 = vmatmul.mubr.bf16.vlgmr.msra.gmra.mrb[16].mxu0 %v765_v54 }
 0x2b1   :  { %2317 = vmatpush3.bf16.msra.mxu0 %v3090_v25  ;;  %2332 = vmatprep.mubr.msk.bf16.mxu0 %vm2938_vm0, %v2936_v0 }
 0x2b2   :  { %2318 = vmatprep.subr.bf16.mxu0 %v2936_v0 }
 0x2b5   :  { %2319 = vmatpush3.bf16.msra.mxu0 %v3100_v28 }
 0x2b6   :  { %2320 = vmatprep.subr.bf16.mxu0 %v2936_v0 }
 0x2b9   :  { %2321 = vmatpush3.bf16.msra.mxu0 %v3113_v30 }
 0x2ba   :  { %2322 = vmatprep.subr.bf16.mxu0 %v2936_v0 }
 0x2bd   :  { %2323 = vmatpush3.bf16.msra.mxu0 %v3121_v32 }
 0x2be   :  { %2324 = vmatprep.subr.bf16.mxu0 %v2936_v0 }
 0x2c1   :  { %2325 = vmatpush3.bf16.msra.mxu0 %v3129_v34 }
 0x2c2   :  { %2326 = vmatprep.subr.bf16.mxu0 %v2936_v0 }
 0x2c5   :  { %2327 = vmatpush3.bf16.msra.mxu0 %v3137_v36 }
 0x2c6   :  { %2328 = vmatprep.subr.bf16.mxu0 %v2936_v0 }
 0x2c9   :  { %2329 = vmatpush3.bf16.msra.mxu0 %v3145_v38 }
 0x2ca   :  { %2330 = vmatprep.subr.bf16.mxu0 %v2936_v0 }
 0x2cd   :  { %2331 = vmatpush3.bf16.msra.mxu0 %v3153_v40 }
 0x2ce   :  { %2356 = vmatprep.subr.bf16.mxu0 %v2936_v0 }
 0x363   :  { %v802_v56 = vpop.f32.mrb[12].mxu0  ;;  %v842_v57 = vpop.f32.mrb[20].mxu1 }
 0x364   :  { %v848_v58 = vadd.f32 %v802_v56, %v767_v55  ;;  %v2254_v24 = vpop.f32.mrb[13].mxu0  ;;  %v2274_v59 = vpop.f32.mrb[21].mxu1  ;;  %v903_v3 = vadd.f32 %v901_v2, %v842_v57 }
 0x365   :  { %v805_v60 = vpop.f32.mrb[14].mxu0  ;;  %v845_v61 = vpop.f32.mrb[22].mxu1 }
 0x366   :  { %v1854_v62 = vmul.f32 -1.442695, %v848_v58  ;;  %v2255_v63 = vpop.f32.mrb[15].mxu0  ;;  %v2275_v1 = vpop.f32.mrb[23].mxu1  ;;  %v1855_v4 = vmul.f32 -1.442695, %v903_v3 }
 0x368   :  { %2697 = vpow2.f32 %v1854_v62 }
 0x369   :  { %2699 = vpow2.f32 %v1855_v4 }
 0x372   :  { %v2698_v5 = vpop.eup %2697 }
 0x373   :  { %v852_v7 = vadd.f32 1.0, %v2698_v5  ;;  %v2700_v9 = vpop.eup %2699 }
 0x374   :  { %v907_v10 = vadd.f32 1.0, %v2700_v9 }
 0x375   :  { %2701 = vrcp.f32 %v852_v7 }
 0x376   :  { %2703 = vrcp.f32 %v907_v10 }
 0x37f   :  { %v2702_v18 = vpop.eup %2701 }
 0x380   :  { %v2704_v44 = vpop.eup %2703 }
 0x381   :  { %v910_v45 = vsub.f32 1.0, %v2704_v44  ;;  %v912_v48 = vmul.f32 %v2704_v44, %v3270_v53 }
 0x383   :  { %v889_v12 = vpop.f32.mrb[16].mxu0 }
 0x384   :  { %v890_v15 = vadd.f32 %v889_v12, %v3206_v13  ;;  %v2294_v16 = vpop.f32.mrb[17].mxu0 }
 0x385   :  { %v892_v20 = vpop.f32.mrb[18].mxu0 }
 0x386   :  { %v895_v26 = vmul.f32 %v2702_v18, %v890_v15  ;;  %v2295_v42 = vpop.f32.mrb[19].mxu0 }
 0x387   :  { %v3406_v42 = vld [vmem:[#allocation8 + $0x18] ss:$12 sps:$4 sm:$0xff]  }
 0x388   :  { %v899_v43 = vadd.f32 %v897_v22, %v895_v26  ;;  %v3398_v26 = vld [vmem:[#allocation8] ss:$12 sps:$4 sm:$0xff]  }
 0x38a   :  { %2705 = vtanh.f32 %v899_v43 }
 0x394   :  { %v2706_v46 = vpop.eup %2705 }
 0x395   :  { %v911_v47 = vmul.f32 %v2706_v46, %v910_v45 }
 0x397   :  { %v3330_v49 = vadd.f32 %v912_v48, %v911_v47 }
 0x399   :  { %v914_v50 = vpack.c.bf16 %v3330_v49, %v3330_v49 }
 0x39b   :  { %2313 = vmatmul.mubr.bf16.vlgmr.msra.gmra.mrb[24].mxu1 %v914_v50  ;;  %2333 = vmatmul.mubr.bf16.vlgmr.msra.gmra.mrb[20].mxu0 %v914_v50 }
 0x39c   :  { %2337 = vmatpush3.bf16.msra.mxu1 %v3096_v27  ;;  %2352 = vmatprep.mubr.msk.bf16.mxu1 %vm2938_vm0, %v2936_v0 }
 0x39d   :  { %2338 = vmatprep.subr.bf16.mxu1 %v2936_v0  ;;  %2357 = vmatpush3.bf16.msra.mxu0 %v3048_v6  ;;  %v916_v6 = vld [vmem:[#allocation2 + $0x3] ss:$8 sm:$0x7] }
 0x39e   :  { %2358 = vmatprep.subr.bf16.mxu0 %v2936_v0  ;;  %2372 = vmatprep.mubr.msk.bf16.mxu0 %vm2938_vm0, %v2936_v0  ;;  %v1050_v56 = vrot.slane %v916_v6, 1  ;;  %v1046_v4 = vrot.slane %v916_v6, 2 }
 0x3a0   :  { %2339 = vmatpush3.bf16.msra.mxu1 %v3103_v29 }
 0x3a1   :  { %2340 = vmatprep.subr.bf16.mxu1 %v2936_v0  ;;  %2359 = vmatpush3.bf16.msra.mxu0 %v3051_v8 }
 0x3a2   :  { %2360 = vmatprep.subr.bf16.mxu0 %v2936_v0 }
 0x3a4   :  { %2341 = vmatpush3.bf16.msra.mxu1 %v3117_v31 }
 0x3a5   :  { %2342 = vmatprep.subr.bf16.mxu1 %v2936_v0  ;;  %2361 = vmatpush3.bf16.msra.mxu0 %v3055_v11 }
 0x3a6   :  { %2362 = vmatprep.subr.bf16.mxu0 %v2936_v0 }
 0x3a8   :  { %2343 = vmatpush3.bf16.msra.mxu1 %v3125_v33 }
 0x3a9   :  { %2344 = vmatprep.subr.bf16.mxu1 %v2936_v0  ;;  %2363 = vmatpush3.bf16.msra.mxu0 %v3059_v14 }
 0x3aa   :  { %2364 = vmatprep.subr.bf16.mxu0 %v2936_v0 }
 0x3ac   :  { %2345 = vmatpush3.bf16.msra.mxu1 %v3133_v35 }
 0x3ad   :  { %2346 = vmatprep.subr.bf16.mxu1 %v2936_v0  ;;  %2365 = vmatpush3.bf16.msra.mxu0 %v3064_v17 }
 0x3ae   :  { %2366 = vmatprep.subr.bf16.mxu0 %v2936_v0 }
 0x3b0   :  { %2347 = vmatpush3.bf16.msra.mxu1 %v3141_v37 }
 0x3b1   :  { %2348 = vmatprep.subr.bf16.mxu1 %v2936_v0  ;;  %2367 = vmatpush3.bf16.msra.mxu0 %v3072_v19 }
 0x3b2   :  { %2368 = vmatprep.subr.bf16.mxu0 %v2936_v0 }
 0x3b4   :  { %2349 = vmatpush3.bf16.msra.mxu1 %v3149_v39 }
 0x3b5   :  { %2350 = vmatprep.subr.bf16.mxu1 %v2936_v0  ;;  %2369 = vmatpush3.bf16.msra.mxu0 %v3077_v21 }
 0x3b6   :  { %2370 = vmatprep.subr.bf16.mxu0 %v2936_v0 }
 0x3b8   :  { %2351 = vmatpush3.bf16.msra.mxu1 %v3157_v41 }
 0x3b9   :  { %2376 = vmatprep.subr.bf16.mxu1 %v2936_v0  ;;  %2371 = vmatpush3.bf16.msra.mxu0 %v3081_v23 }
 0x3ba   :  { %2396 = vmatprep.subr.bf16.mxu0 %v2936_v0 }
 0x3bb   :  { %2353 = vmatmul.mubr.bf16.vlgmr.msra.gmra.mrb[28].mxu1 %v914_v50 }
 0x3bc   :  { %2377 = vmatpush3.bf16.msra.mxu1 %v3090_v25  ;;  %2392 = vmatprep.mubr.msk.bf16.mxu1 %vm2938_vm0, %v2936_v0 }
 0x3bd   :  { %2378 = vmatprep.subr.bf16.mxu1 %v2936_v0 }
 0x3c0   :  { %2379 = vmatpush3.bf16.msra.mxu1 %v3100_v28 }
 0x3c1   :  { %2380 = vmatprep.subr.bf16.mxu1 %v2936_v0 }
 0x3c4   :  { %2381 = vmatpush3.bf16.msra.mxu1 %v3113_v30 }
 0x3c5   :  { %2382 = vmatprep.subr.bf16.mxu1 %v2936_v0 }
 0x3c8   :  { %2383 = vmatpush3.bf16.msra.mxu1 %v3121_v32 }
 0x3c9   :  { %2384 = vmatprep.subr.bf16.mxu1 %v2936_v0 }
 0x3cc   :  { %2385 = vmatpush3.bf16.msra.mxu1 %v3129_v34 }
 0x3cd   :  { %2386 = vmatprep.subr.bf16.mxu1 %v2936_v0 }
 0x3d0   :  { %2387 = vmatpush3.bf16.msra.mxu1 %v3137_v36 }
 0x3d1   :  { %2388 = vmatprep.subr.bf16.mxu1 %v2936_v0 }
 0x3d4   :  { %2389 = vmatpush3.bf16.msra.mxu1 %v3145_v38 }
 0x3d5   :  { %2390 = vmatprep.subr.bf16.mxu1 %v2936_v0 }
 0x3d8   :  { %2391 = vmatpush3.bf16.msra.mxu1 %v3153_v40 }
 0x3d9   :  { %2416 = vmatprep.subr.bf16.mxu1 %v2936_v0 }
 0x46e   :  { %v951_v8 = vpop.f32.mrb[24].mxu1  ;;  %v991_v11 = vpop.f32.mrb[20].mxu0 }
 0x46f   :  { %v997_v14 = vadd.f32 %v951_v8, %v916_v6  ;;  %v2314_v17 = vpop.f32.mrb[25].mxu1  ;;  %v2334_v19 = vpop.f32.mrb[21].mxu0  ;;  %v1052_v57 = vadd.f32 %v1050_v56, %v991_v11 }
 0x470   :  { %v954_v51 = vpop.f32.mrb[26].mxu1  ;;  %v994_v52 = vpop.f32.mrb[22].mxu0 }
 0x471   :  { %v1856_v53 = vmul.f32 -1.442695, %v997_v14  ;;  %v2315_v54 = vpop.f32.mrb[27].mxu1  ;;  %v2335_v55 = vpop.f32.mrb[23].mxu0  ;;  %v1857_v58 = vmul.f32 -1.442695, %v1052_v57 }
 0x473   :  { %2707 = vpow2.f32 %v1856_v53 }
 0x474   :  { %2709 = vpow2.f32 %v1857_v58 }
 0x47d   :  { %v2708_v24 = vpop.eup %2707 }
 0x47e   :  { %v1001_v59 = vadd.f32 1.0, %v2708_v24  ;;  %v2710_v60 = vpop.eup %2709  ;;  %v3466_v24 = vld [vmem:[#allocation8 + $0x8] ss:$12 sps:$4 sm:$0xff]  }
 0x47f   :  { %v1056_v61 = vadd.f32 1.0, %v2710_v60  ;;  %v3482_v60 = vld [vmem:[#allocation8 + $0x38] ss:$12 sps:$4 sm:$0xff]  }
 0x480   :  { %2711 = vrcp.f32 %v1001_v59  ;;  %v3476_v59 = vld [vmem:[#allocation8 + $0x20] ss:$12 sps:$4 sm:$0xff]  }
 0x481   :  { %2713 = vrcp.f32 %v1056_v61  ;;  %v3488_v61 = vld [vmem:[#allocation8 + $0x50] ss:$12 sps:$4 sm:$0xff]  }
 0x48a   :  { %v2712_v2 = vpop.eup %2711 }
 0x48b   :  { %v2714_v10 = vpop.eup %2713 }
 0x48c   :  { %v1059_v12 = vsub.f32 1.0, %v2714_v10  ;;  %v1061_v18 = vmul.f32 %v2714_v10, %v3330_v49  ;;  %v3548_v10 = vld [vmem:[#allocation8 + $0xac] ss:$12 sps:$4 sm:$0xff]  }
 0x48e   :  { %v1038_v62 = vpop.f32.mrb[28].mxu1 }
 0x48f   :  { %v1039_v63 = vadd.f32 %v1038_v62, %v3206_v13  ;;  %v2354_v1 = vpop.f32.mrb[29].mxu1  ;;  %v3494_v62 = vld [vmem:[#allocation8 + $0x68] ss:$12 sps:$4 sm:$0xff]  }
 0x490   :  { %v1041_v3 = vpop.f32.mrb[30].mxu1  ;;  %v3508_v1 = vld [vmem:[#allocation8 + $0x90] ss:$12 sps:$4 sm:$0xff]  }
 0x491   :  { %v1044_v5 = vmul.f32 %v2712_v2, %v1039_v63  ;;  %v2355_v7 = vpop.f32.mrb[31].mxu1  ;;  %v3500_v63 = vld [vmem:[#allocation8 + $0x80] ss:$12 sps:$4 sm:$0xff]   ;;  %v3514_v2 = vld [vmem:[#allocation8 + $0xa8] ss:$12 sps:$4 sm:$0xff]  }
 0x492   :  { %v3524_v3 = vld [vmem:[#allocation8 + $0x1c] ss:$12 sps:$4 sm:$0xff]  }
 0x493   :  { %v1048_v9 = vadd.f32 %v1046_v4, %v1044_v5  ;;  %v3532_v4 = vld [vmem:[#allocation8 + $0x4c] ss:$12 sps:$4 sm:$0xff]   ;;  %v3536_v5 = vld [vmem:[#allocation8 + $0x64] ss:$12 sps:$4 sm:$0xff]   ;;  %v3540_v7 = vld [vmem:[#allocation8 + $0x7c] ss:$12 sps:$4 sm:$0xff]  }
 0x495   :  { %2715 = vtanh.f32 %v1048_v9  ;;  %v3544_v9 = vld [vmem:[#allocation8 + $0x94] ss:$12 sps:$4 sm:$0xff]  }
 0x49f   :  { %v2716_v15 = vpop.eup %2715 }
 0x4a0   :  { %v1060_v16 = vmul.f32 %v2716_v15, %v1059_v12  ;;  %v1214_v12 = vld [vmem:[#allocation2 + $0x5] ss:$8 sm:$0x7] }
 0x4a2   :  { %v3390_v20 = vadd.f32 %v1061_v18, %v1060_v16 }
 0x4a4   :  { %v1063_v22 = vpack.c.bf16 %v3390_v20, %v3390_v20 }
 0x4a6   :  { %2373 = vmatmul.mubr.bf16.vlgmr.msra.gmra.mrb[24].mxu0 %v1063_v22  ;;  %2393 = vmatmul.mubr.bf16.vlgmr.msra.gmra.mrb[32].mxu1 %v1063_v22 }
 0x4a7   :  { %2397 = vmatpush3.bf16.msra.mxu0 %v3096_v27  ;;  %2412 = vmatprep.mubr.msk.bf16.mxu0 %vm2938_vm0, %v2936_v0  ;;  %v3412_v27 = vld [vmem:[#allocation8 + $0x30] ss:$12 sps:$4 sm:$0xff]  }
 0x4a8   :  { %2398 = vmatprep.subr.bf16.mxu0 %v2936_v0  ;;  %2417 = vmatpush3.bf16.msra.mxu1 %v3398_v26 }
 0x4a9   :  { %2418 = vmatprep.subr.bf16.mxu1 %v2936_v0  ;;  %2432 = vmatprep.mubr.msk.bf16.mxu1 %vm2938_vm0, %v2936_v0 }
 0x4ab   :  { %2399 = vmatpush3.bf16.msra.mxu0 %v3103_v29  ;;  %v3418_v29 = vld [vmem:[#allocation8 + $0x48] ss:$12 sps:$4 sm:$0xff]  }
 0x4ac   :  { %2400 = vmatprep.subr.bf16.mxu0 %v2936_v0  ;;  %2419 = vmatpush3.bf16.msra.mxu1 %v3406_v42 }
 0x4ad   :  { %2420 = vmatprep.subr.bf16.mxu1 %v2936_v0 }
 0x4af   :  { %2401 = vmatpush3.bf16.msra.mxu0 %v3117_v31  ;;  %v3424_v31 = vld [vmem:[#allocation8 + $0x60] ss:$12 sps:$4 sm:$0xff]  }
 0x4b0   :  { %2402 = vmatprep.subr.bf16.mxu0 %v2936_v0  ;;  %2421 = vmatpush3.bf16.msra.mxu1 %v3412_v27 }
 0x4b1   :  { %2422 = vmatprep.subr.bf16.mxu1 %v2936_v0 }
 0x4b3   :  { %2403 = vmatpush3.bf16.msra.mxu0 %v3125_v33  ;;  %v3430_v33 = vld [vmem:[#allocation8 + $0x78] ss:$12 sps:$4 sm:$0xff]  }
 0x4b4   :  { %2404 = vmatprep.subr.bf16.mxu0 %v2936_v0  ;;  %2423 = vmatpush3.bf16.msra.mxu1 %v3418_v29 }
 0x4b5   :  { %2424 = vmatprep.subr.bf16.mxu1 %v2936_v0 }
 0x4b7   :  { %2405 = vmatpush3.bf16.msra.mxu0 %v3133_v35 }
 0x4b8   :  { %2406 = vmatprep.subr.bf16.mxu0 %v2936_v0  ;;  %2425 = vmatpush3.bf16.msra.mxu1 %v3424_v31 }
 0x4b9   :  { %2426 = vmatprep.subr.bf16.mxu1 %v2936_v0 }
 0x4bb   :  { %2407 = vmatpush3.bf16.msra.mxu0 %v3141_v37 }
 0x4bc   :  { %2408 = vmatprep.subr.bf16.mxu0 %v2936_v0  ;;  %2427 = vmatpush3.bf16.msra.mxu1 %v3430_v33 }
 0x4bd   :  { %2428 = vmatprep.subr.bf16.mxu1 %v2936_v0 }
 0x4bf   :  { %2409 = vmatpush3.bf16.msra.mxu0 %v3149_v39 }
 0x4c0   :  { %2410 = vmatprep.subr.bf16.mxu0 %v2936_v0  ;;  %2429 = vmatpush3.bf16.msra.mxu1 %v3077_v21  ;;  %v1065_v21 = vld [vmem:[#allocation2 + $0x4] ss:$8 sm:$0x7] }
 0x4c1   :  { %2430 = vmatprep.subr.bf16.mxu1 %v2936_v0  ;;  %v1199_v44 = vrot.slane %v1065_v21, 1  ;;  %v1195_v14 = vrot.slane %v1065_v21, 2 }
 0x4c3   :  { %2411 = vmatpush3.bf16.msra.mxu0 %v3157_v41 }
 0x4c4   :  { %2436 = vmatprep.subr.bf16.mxu0 %v2936_v0  ;;  %2431 = vmatpush3.bf16.msra.mxu1 %v3081_v23 }
 0x4c5   :  { %2456 = vmatprep.subr.bf16.mxu1 %v2936_v0 }
 0x4c6   :  { %2413 = vmatmul.mubr.bf16.vlgmr.msra.gmra.mrb[28].mxu0 %v1063_v22 }
 0x4c7   :  { %2437 = vmatpush3.bf16.msra.mxu0 %v3090_v25  ;;  %2452 = vmatprep.mubr.msk.bf16.mxu0 %vm2938_vm0, %v2936_v0 }
 0x4c8   :  { %2438 = vmatprep.subr.bf16.mxu0 %v2936_v0 }
 0x4cb   :  { %2439 = vmatpush3.bf16.msra.mxu0 %v3100_v28 }
 0x4cc   :  { %2440 = vmatprep.subr.bf16.mxu0 %v2936_v0 }
 0x4cf   :  { %2441 = vmatpush3.bf16.msra.mxu0 %v3113_v30 }
 0x4d0   :  { %2442 = vmatprep.subr.bf16.mxu0 %v2936_v0 }
 0x4d3   :  { %2443 = vmatpush3.bf16.msra.mxu0 %v3121_v32 }
 0x4d4   :  { %2444 = vmatprep.subr.bf16.mxu0 %v2936_v0 }
 0x4d7   :  { %2445 = vmatpush3.bf16.msra.mxu0 %v3129_v34 }
 0x4d8   :  { %2446 = vmatprep.subr.bf16.mxu0 %v2936_v0 }
 0x4db   :  { %2447 = vmatpush3.bf16.msra.mxu0 %v3137_v36 }
 0x4dc   :  { %2448 = vmatprep.subr.bf16.mxu0 %v2936_v0 }
 0x4df   :  { %2449 = vmatpush3.bf16.msra.mxu0 %v3145_v38 }
 0x4e0   :  { %2450 = vmatprep.subr.bf16.mxu0 %v2936_v0 }
 0x4e3   :  { %2451 = vmatpush3.bf16.msra.mxu0 %v3153_v40 }
 0x4e4   :  { %2476 = vmatprep.subr.bf16.mxu0 %v2936_v0 }
 0x579   :  { %v1100_v23 = vpop.f32.mrb[24].mxu0  ;;  %v1140_v25 = vpop.f32.mrb[32].mxu1 }
 0x57a   :  { %v1146_v28 = vadd.f32 %v1100_v23, %v1065_v21  ;;  %v2374_v30 = vpop.f32.mrb[25].mxu0  ;;  %v2394_v32 = vpop.f32.mrb[33].mxu1  ;;  %v1201_v38 = vadd.f32 %v1199_v44, %v1140_v25 }
 0x57b   :  { %v1103_v34 = vpop.f32.mrb[26].mxu0  ;;  %v1143_v35 = vpop.f32.mrb[34].mxu1  ;;  %v1348_v32 = vrot.slane %v1214_v12, 1 }
 0x57c   :  { %v1858_v37 = vmul.f32 -1.442695, %v1146_v28  ;;  %v2375_v36 = vpop.f32.mrb[27].mxu0  ;;  %v2395_v43 = vpop.f32.mrb[35].mxu1  ;;  %v1859_v45 = vmul.f32 -1.442695, %v1201_v38 }
 0x57e   :  { %2717 = vpow2.f32 %v1858_v37 }
 0x57f   :  { %2719 = vpow2.f32 %v1859_v45 }
 0x588   :  { %v2718_v46 = vpop.eup %2717 }
 0x589   :  { %v1150_v40 = vadd.f32 1.0, %v2718_v46  ;;  %v2720_v47 = vpop.eup %2719 }
 0x58a   :  { %v1205_v48 = vadd.f32 1.0, %v2720_v47 }
 0x58b   :  { %2721 = vrcp.f32 %v1150_v40 }
 0x58c   :  { %2723 = vrcp.f32 %v1205_v48  ;;  %v1344_v48 = vrot.slane %v1214_v12, 2 }
 0x595   :  { %v2722_v8 = vpop.eup %2721 }
 0x596   :  { %v2724_v52 = vpop.eup %2723 }
 0x597   :  { %v1208_v53 = vsub.f32 1.0, %v2724_v52  ;;  %v1210_v56 = vmul.f32 %v2724_v52, %v3390_v20 }
 0x599   :  { %v1187_v49 = vpop.f32.mrb[28].mxu0 }
 0x59a   :  { %v1188_v50 = vadd.f32 %v1187_v49, %v3206_v13  ;;  %v2414_v6 = vpop.f32.mrb[29].mxu0 }
 0x59b   :  { %v1190_v11 = vpop.f32.mrb[30].mxu0 }
 0x59c   :  { %v1193_v17 = vmul.f32 %v2722_v8, %v1188_v50  ;;  %v2415_v19 = vpop.f32.mrb[31].mxu0 }
 0x59e   :  { %v1197_v51 = vadd.f32 %v1195_v14, %v1193_v17 }
 0x5a0   :  { %2725 = vtanh.f32 %v1197_v51 }
 0x5aa   :  { %v2726_v54 = vpop.eup %2725 }
 0x5ab   :  { %v1209_v55 = vmul.f32 %v2726_v54, %v1208_v53 }
 0x5ad   :  { %v3462_v57 = vadd.f32 %v1210_v56, %v1209_v55 }
 0x5af   :  { %v1212_v58 = vpack.c.bf16 %v3462_v57, %v3462_v57 }
 0x5b1   :  { %2433 = vmatmul.mubr.bf16.vlgmr.msra.gmra.mrb[36].mxu1 %v1212_v58  ;;  %2453 = vmatmul.mubr.bf16.vlgmr.msra.gmra.mrb[32].mxu0 %v1212_v58 }
 0x5b2   :  { %2457 = vmatpush3.bf16.msra.mxu1 %v3466_v24  ;;  %2472 = vmatprep.mubr.msk.bf16.mxu1 %vm2938_vm0, %v2936_v0 }
 0x5b3   :  { %2458 = vmatprep.subr.bf16.mxu1 %v2936_v0  ;;  %2477 = vmatpush3.bf16.msra.mxu0 %v3398_v26 }
 0x5b4   :  { %2478 = vmatprep.subr.bf16.mxu0 %v2936_v0  ;;  %2492 = vmatprep.mubr.msk.bf16.mxu0 %vm2938_vm0, %v2936_v0 }
 0x5b6   :  { %2459 = vmatpush3.bf16.msra.mxu1 %v3476_v59 }
 0x5b7   :  { %2460 = vmatprep.subr.bf16.mxu1 %v2936_v0  ;;  %2479 = vmatpush3.bf16.msra.mxu0 %v3406_v42 }
 0x5b8   :  { %2480 = vmatprep.subr.bf16.mxu0 %v2936_v0 }
 0x5ba   :  { %2461 = vmatpush3.bf16.msra.mxu1 %v3482_v60 }
 0x5bb   :  { %2462 = vmatprep.subr.bf16.mxu1 %v2936_v0  ;;  %2481 = vmatpush3.bf16.msra.mxu0 %v3412_v27 }
 0x5bc   :  { %2482 = vmatprep.subr.bf16.mxu0 %v2936_v0 }
 0x5be   :  { %2463 = vmatpush3.bf16.msra.mxu1 %v3488_v61 }
 0x5bf   :  { %2464 = vmatprep.subr.bf16.mxu1 %v2936_v0  ;;  %2483 = vmatpush3.bf16.msra.mxu0 %v3418_v29 }
 0x5c0   :  { %2484 = vmatprep.subr.bf16.mxu0 %v2936_v0 }
 0x5c2   :  { %2465 = vmatpush3.bf16.msra.mxu1 %v3494_v62 }
 0x5c3   :  { %2466 = vmatprep.subr.bf16.mxu1 %v2936_v0  ;;  %2485 = vmatpush3.bf16.msra.mxu0 %v3424_v31 }
 0x5c4   :  { %2486 = vmatprep.subr.bf16.mxu0 %v2936_v0 }
 0x5c6   :  { %2467 = vmatpush3.bf16.msra.mxu1 %v3500_v63 }
 0x5c7   :  { %2468 = vmatprep.subr.bf16.mxu1 %v2936_v0  ;;  %2487 = vmatpush3.bf16.msra.mxu0 %v3430_v33 }
 0x5c8   :  { %2488 = vmatprep.subr.bf16.mxu0 %v2936_v0 }
 0x5ca   :  { %2469 = vmatpush3.bf16.msra.mxu1 %v3149_v39  ;;  %v3518_v39 = vld [vmem:[#allocation8 + $0x4] ss:$12 sps:$4 sm:$0xff]  }
 0x5cb   :  { %2470 = vmatprep.subr.bf16.mxu1 %v2936_v0  ;;  %2489 = vmatpush3.bf16.msra.mxu0 %v3508_v1 }
 0x5cc   :  { %2490 = vmatprep.subr.bf16.mxu0 %v2936_v0 }
 0x5ce   :  { %2471 = vmatpush3.bf16.msra.mxu1 %v3157_v41  ;;  %v3528_v41 = vld [vmem:[#allocation8 + $0x34] ss:$12 sps:$4 sm:$0xff]  }
 0x5cf   :  { %2496 = vmatprep.subr.bf16.mxu1 %v2936_v0  ;;  %2491 = vmatpush3.bf16.msra.mxu0 %v3514_v2 }
 0x5d0   :  { %2516 = vmatprep.subr.bf16.mxu0 %v2936_v0 }
 0x5d1   :  { %2473 = vmatmul.mubr.bf16.vlgmr.msra.gmra.mrb[40].mxu1 %v1212_v58 }
 0x5d2   :  { %2497 = vmatpush3.bf16.msra.mxu1 %v3518_v39  ;;  %2512 = vmatprep.mubr.msk.bf16.mxu1 %vm2938_vm0, %v2936_v0 }
 0x5d3   :  { %2498 = vmatprep.subr.bf16.mxu1 %v2936_v0 }
 0x5d6   :  { %2499 = vmatpush3.bf16.msra.mxu1 %v3524_v3 }
 0x5d7   :  { %2500 = vmatprep.subr.bf16.mxu1 %v2936_v0 }
 0x5da   :  { %2501 = vmatpush3.bf16.msra.mxu1 %v3528_v41 }
 0x5db   :  { %2502 = vmatprep.subr.bf16.mxu1 %v2936_v0 }
 0x5de   :  { %2503 = vmatpush3.bf16.msra.mxu1 %v3532_v4 }
 0x5df   :  { %2504 = vmatprep.subr.bf16.mxu1 %v2936_v0 }
 0x5e2   :  { %2505 = vmatpush3.bf16.msra.mxu1 %v3536_v5 }
 0x5e3   :  { %2506 = vmatprep.subr.bf16.mxu1 %v2936_v0 }
 0x5e6   :  { %2507 = vmatpush3.bf16.msra.mxu1 %v3540_v7 }
 0x5e7   :  { %2508 = vmatprep.subr.bf16.mxu1 %v2936_v0 }
 0x5ea   :  { %2509 = vmatpush3.bf16.msra.mxu1 %v3544_v9 }
 0x5eb   :  { %2510 = vmatprep.subr.bf16.mxu1 %v2936_v0 }
 0x5ee   :  { %2511 = vmatpush3.bf16.msra.mxu1 %v3548_v10 }
 0x5ef   :  { %2536 = vmatprep.subr.bf16.mxu1 %v2936_v0 }
 0x684   :  { %v1249_v15 = vpop.f32.mrb[36].mxu1  ;;  %v1289_v16 = vpop.f32.mrb[32].mxu0 }
 0x685   :  { %v1295_v18 = vadd.f32 %v1249_v15, %v1214_v12  ;;  %v2434_v20 = vpop.f32.mrb[37].mxu1  ;;  %v2454_v22 = vpop.f32.mrb[33].mxu0  ;;  %v1350_v34 = vadd.f32 %v1348_v32, %v1289_v16 }
 0x686   :  { %v1252_v21 = vpop.f32.mrb[38].mxu1  ;;  %v1292_v23 = vpop.f32.mrb[34].mxu0 }
 0x687   :  { %v1860_v25 = vmul.f32 -1.442695, %v1295_v18  ;;  %v2435_v28 = vpop.f32.mrb[39].mxu1  ;;  %v2455_v30 = vpop.f32.mrb[35].mxu0  ;;  %v1861_v35 = vmul.f32 -1.442695, %v1350_v34 }
 0x689   :  { %2727 = vpow2.f32 %v1860_v25 }
 0x68a   :  { %2729 = vpow2.f32 %v1861_v35 }
 0x693   :  { %v2728_v37 = vpop.eup %2727 }
 0x694   :  { %v1299_v36 = vadd.f32 1.0, %v2728_v37  ;;  %v2730_v43 = vpop.eup %2729  ;;  %v2675_v37 = vld [vmem:[#allocation9 + $0x30] sm:$0xff]  }
 0x695   :  { %v1354_v44 = vadd.f32 1.0, %v2730_v43  ;;  %v1512_v43 = vld [vmem:[#allocation2 + $0x7] ss:$8 sm:$0x7] }
 0x696   :  { %2731 = vrcp.f32 %v1299_v36  ;;  %v2676_v36 = vld [vmem:[#allocation9 + $0x38] sm:$0xff]  }
 0x697   :  { %2733 = vrcp.f32 %v1354_v44 }
 0x6a0   :  { %v2732_v40 = vpop.eup %2731 }
 0x6a1   :  { %v2734_v8 = vpop.eup %2733 }
 0x6a2   :  { %v1357_v11 = vsub.f32 1.0, %v2734_v8  ;;  %v1359_v19 = vmul.f32 %v2734_v8, %v3462_v57  ;;  %v1646_v8 = vrot.slane %v1512_v43, 1 }
 0x6a4   :  { %v1336_v38 = vpop.f32.mrb[40].mxu1 }
 0x6a5   :  { %v1337_v45 = vadd.f32 %v1336_v38, %v3206_v13  ;;  %v2474_v46 = vpop.f32.mrb[41].mxu1 }
 0x6a6   :  { %v1339_v47 = vpop.f32.mrb[42].mxu1 }
 0x6a7   :  { %v1342_v49 = vmul.f32 %v2732_v40, %v1337_v45  ;;  %v2475_v50 = vpop.f32.mrb[43].mxu1 }
 0x6a9   :  { %v1346_v6 = vadd.f32 %v1344_v48, %v1342_v49 }
 0x6ab   :  { %2735 = vtanh.f32 %v1346_v6 }
 0x6b5   :  { %v2736_v14 = vpop.eup %2735 }
 0x6b6   :  { %v1358_v17 = vmul.f32 %v2736_v14, %v1357_v11 }
 0x6b8   :  { %v3554_v51 = vadd.f32 %v1359_v19, %v1358_v17 }
 0x6ba   :  { %v1361_v13 = vpack.c.bf16 %v3554_v51, %v3554_v51 }
 0x6bc   :  { %2493 = vmatmul.mubr.bf16.vlgmr.msra.gmra.mrb[36].mxu0 %v1361_v13  ;;  %2513 = vmatmul.mubr.bf16.vlgmr.msra.gmra.mrb[44].mxu1 %v1361_v13 }
 0x6bd   :  { %2517 = vmatpush3.bf16.msra.mxu0 %v3466_v24  ;;  %2532 = vmatprep.mubr.msk.bf16.mxu0 %vm2938_vm0, %v2936_v0 }
 0x6be   :  { %2518 = vmatprep.subr.bf16.mxu0 %v2936_v0  ;;  %2537 = vmatpush3.bf16.msra.mxu1 %v3398_v26  ;;  %v3586_v26 = vld [vmem:[#allocation8 + $0x98] ss:$12 sps:$4 sm:$0xff]  }
 0x6bf   :  { %2538 = vmatprep.subr.bf16.mxu1 %v2936_v0  ;;  %2552 = vmatprep.mubr.msk.bf16.mxu1 %vm2938_vm0, %v2936_v0 }
 0x6c1   :  { %2519 = vmatpush3.bf16.msra.mxu0 %v3476_v59 }
 0x6c2   :  { %2520 = vmatprep.subr.bf16.mxu0 %v2936_v0  ;;  %2539 = vmatpush3.bf16.msra.mxu1 %v3406_v42  ;;  %v3592_v42 = vld [vmem:[#allocation8 + $0xb0] ss:$12 sps:$4 sm:$0xff]  }
 0x6c3   :  { %2540 = vmatprep.subr.bf16.mxu1 %v2936_v0 }
 0x6c5   :  { %2521 = vmatpush3.bf16.msra.mxu0 %v3482_v60 }
 0x6c6   :  { %2522 = vmatprep.subr.bf16.mxu0 %v2936_v0  ;;  %2541 = vmatpush3.bf16.msra.mxu1 %v3412_v27  ;;  %v1363_v27 = vld [vmem:[#allocation2 + $0x6] ss:$8 sm:$0x7] }
 0x6c7   :  { %2542 = vmatprep.subr.bf16.mxu1 %v2936_v0  ;;  %v1493_v18 = vrot.slane %v1363_v27, 2 }
 0x6c9   :  { %2523 = vmatpush3.bf16.msra.mxu0 %v3488_v61 }
 0x6ca   :  { %2524 = vmatprep.subr.bf16.mxu0 %v2936_v0  ;;  %2543 = vmatpush3.bf16.msra.mxu1 %v3418_v29 }
 0x6cb   :  { %2544 = vmatprep.subr.bf16.mxu1 %v2936_v0 }
 0x6cd   :  { %2525 = vmatpush3.bf16.msra.mxu0 %v3494_v62 }
 0x6ce   :  { %2526 = vmatprep.subr.bf16.mxu0 %v2936_v0  ;;  %2545 = vmatpush3.bf16.msra.mxu1 %v3424_v31 }
 0x6cf   :  { %2546 = vmatprep.subr.bf16.mxu1 %v2936_v0 }
 0x6d1   :  { %2527 = vmatpush3.bf16.msra.mxu0 %v3500_v63 }
 0x6d2   :  { %2528 = vmatprep.subr.bf16.mxu0 %v2936_v0  ;;  %2547 = vmatpush3.bf16.msra.mxu1 %v3430_v33 }
 0x6d3   :  { %2548 = vmatprep.subr.bf16.mxu1 %v2936_v0 }
 0x6d5   :  { %2529 = vmatpush3.bf16.msra.mxu0 %v3586_v26 }
 0x6d6   :  { %2530 = vmatprep.subr.bf16.mxu0 %v2936_v0  ;;  %2549 = vmatpush3.bf16.msra.mxu1 %v3508_v1  ;;  %v1497_v1 = vrot.slane %v1363_v27, 1 }
 0x6d7   :  { %2550 = vmatprep.subr.bf16.mxu1 %v2936_v0 }
 0x6d9   :  { %2531 = vmatpush3.bf16.msra.mxu0 %v3592_v42 }
 0x6da   :  { %2556 = vmatprep.subr.bf16.mxu0 %v2936_v0  ;;  %2551 = vmatpush3.bf16.msra.mxu1 %v3514_v2 }
 0x6db   :  { %2576 = vmatprep.subr.bf16.mxu1 %v2936_v0 }
 0x6dc   :  { %2533 = vmatmul.mubr.bf16.vlgmr.msra.gmra.mrb[40].mxu0 %v1361_v13 }
 0x6dd   :  { %2557 = vmatpush3.bf16.msra.mxu0 %v3518_v39  ;;  %2572 = vmatprep.mubr.msk.bf16.mxu0 %vm2938_vm0, %v2936_v0 }
 0x6de   :  { %2558 = vmatprep.subr.bf16.mxu0 %v2936_v0 }
 0x6e1   :  { %2559 = vmatpush3.bf16.msra.mxu0 %v3524_v3 }
 0x6e2   :  { %2560 = vmatprep.subr.bf16.mxu0 %v2936_v0 }
 0x6e5   :  { %2561 = vmatpush3.bf16.msra.mxu0 %v3528_v41 }
 0x6e6   :  { %2562 = vmatprep.subr.bf16.mxu0 %v2936_v0 }
 0x6e9   :  { %2563 = vmatpush3.bf16.msra.mxu0 %v3532_v4 }
 0x6ea   :  { %2564 = vmatprep.subr.bf16.mxu0 %v2936_v0 }
 0x6ed   :  { %2565 = vmatpush3.bf16.msra.mxu0 %v3536_v5 }
 0x6ee   :  { %2566 = vmatprep.subr.bf16.mxu0 %v2936_v0 }
 0x6f1   :  { %2567 = vmatpush3.bf16.msra.mxu0 %v3540_v7 }
 0x6f2   :  { %2568 = vmatprep.subr.bf16.mxu0 %v2936_v0 }
 0x6f5   :  { %2569 = vmatpush3.bf16.msra.mxu0 %v3544_v9  ;;  %v3619_v9 = vld [vmem:[%s3687_s5] sm:$0x1] }
 0x6f6   :  { %2570 = vmatprep.subr.bf16.mxu0 %v2936_v0 }
 0x6f9   :  { %2571 = vmatpush3.bf16.msra.mxu0 %v3548_v10 }
 0x6fa   :  { %2596 = vmatprep.subr.bf16.mxu0 %v2936_v0 }
 0x78f   :  { %v1398_v29 = vpop.f32.mrb[36].mxu0  ;;  %v1438_v31 = vpop.f32.mrb[44].mxu1 }
 0x790   :  { %v1444_v33 = vadd.f32 %v1398_v29, %v1363_v27  ;;  %v2494_v52 = vpop.f32.mrb[37].mxu0  ;;  %v2514_v53 = vpop.f32.mrb[45].mxu1  ;;  %v1499_v2 = vadd.f32 %v1497_v1, %v1438_v31  ;;  %v1642_v31 = vrot.slane %v1512_v43, 2 }
 0x791   :  { %v1401_v54 = vpop.f32.mrb[38].mxu0  ;;  %v1441_v55 = vpop.f32.mrb[46].mxu1 }
 0x792   :  { %v1862_v56 = vmul.f32 -1.442695, %v1444_v33  ;;  %v2495_v57 = vpop.f32.mrb[39].mxu0  ;;  %v2515_v58 = vpop.f32.mrb[47].mxu1  ;;  %v1863_v39 = vmul.f32 -1.442695, %v1499_v2 }
 0x794   :  { %2737 = vpow2.f32 %v1862_v56 }
 0x795   :  { %2739 = vpow2.f32 %v1863_v39  ;;  %v1676_v39 = vld [vmem:[%s3689_s7] sm:$0x1]  ;;  %s2878_s7 = scalar_lea.vmem %s1798_s25, 32 }
 0x796   :  { %p2880_p6 = scmp.lt.s32.totalorder %s2878_s7, %s2874_s0 }
 0x798   :  { %p2881_p7 = por %p2880_p6, %p2879_p5 }
 0x79a   :  { %p2882_p8 = pnand %p2881_p7, %p2875_p4 }
 0x79e   :  { %v2738_v3 = vpop.eup %2737 }
 0x79f   :  { %v1448_v41 = vadd.f32 1.0, %v2738_v3  ;;  %v2740_v4 = vpop.eup %2739 }
 0x7a0   :  { %v1503_v5 = vadd.f32 1.0, %v2740_v4 }
 0x7a1   :  { %2741 = vrcp.f32 %v1448_v41 }
 0x7a2   :  { %2743 = vrcp.f32 %v1503_v5 }
 0x7ab   :  { %v2742_v15 = vpop.eup %2741 }
 0x7ac   :  { %v2744_v23 = vpop.eup %2743 }
 0x7ad   :  { %v1506_v25 = vsub.f32 1.0, %v2744_v23  ;;  %v1508_v32 = vmul.f32 %v2744_v23, %v3554_v51 }
 0x7af   :  { %v1485_v7 = vpop.f32.mrb[40].mxu0 }
 0x7b0   :  { %v1486_v10 = vadd.f32 %v3619_v9, %v1485_v7  ;;  %v2534_v12 = vpop.f32.mrb[41].mxu0 }
 0x7b1   :  { %v1488_v16 = vpop.f32.mrb[42].mxu0 }
 0x7b2   :  { %v1491_v20 = vmul.f32 %v2742_v15, %v1486_v10  ;;  %v2535_v22 = vpop.f32.mrb[43].mxu0 }
 0x7b4   :  { %v1495_v21 = vadd.f32 %v1493_v18, %v1491_v20 }
 0x7b6   :  { %2745 = vtanh.f32 %v1495_v21 }
 0x7c0   :  { %v2746_v28 = vpop.eup %2745 }
 0x7c1   :  { %v1507_v30 = vmul.f32 %v2746_v28, %v1506_v25 }
 0x7c3   :  { %v3623_v34 = vadd.f32 %v1508_v32, %v1507_v30 }
 0x7c5   :  { %v1510_v35 = vpack.c.bf16 %v3623_v34, %v3623_v34 }
 0x7c7   :  { %2553 = vmatmul.mubr.bf16.vlgmr.msra.gmra.mrb[48].mxu1 %v1510_v35  ;;  %2573 = vmatmul.mubr.bf16.vlgmr.msra.gmra.mrb[44].mxu0 %v1510_v35 }
 0x7c8   :  { %2577 = vmatpush3.bf16.msra.mxu1 %v3466_v24  ;;  %2592 = vmatprep.mubr.msk.bf16.mxu1 %vm2938_vm0, %v2936_v0  ;;  %v2669_v24 = vld [vmem:[#allocation9] sm:$0xff]  }
 0x7c9   :  { %2578 = vmatprep.subr.bf16.mxu1 %v2936_v0  ;;  %2612 = vmatprep.mubr.msk.bf16.mxu0 %vm2938_vm0, %v2936_v0 }
 0x7ca   :  { %2597 = vmatpush3.bf16.msra.mxu0 %v2669_v24 }
 0x7cb   :  { %2598 = vmatprep.subr.bf16.mxu0 %v2936_v0 }
 0x7cc   :  { %2579 = vmatpush3.bf16.msra.mxu1 %v3476_v59  ;;  %v2670_v59 = vld [vmem:[#allocation9 + $0x8] sm:$0xff]  }
 0x7cd   :  { %2580 = vmatprep.subr.bf16.mxu1 %v2936_v0 }
 0x7ce   :  { %2599 = vmatpush3.bf16.msra.mxu0 %v2670_v59 }
 0x7cf   :  { %2600 = vmatprep.subr.bf16.mxu0 %v2936_v0 }
 0x7d0   :  { %2581 = vmatpush3.bf16.msra.mxu1 %v3482_v60  ;;  %v2671_v60 = vld [vmem:[#allocation9 + $0x10] sm:$0xff]  }
 0x7d1   :  { %2582 = vmatprep.subr.bf16.mxu1 %v2936_v0 }
 0x7d2   :  { %2601 = vmatpush3.bf16.msra.mxu0 %v2671_v60 }
 0x7d3   :  { %2602 = vmatprep.subr.bf16.mxu0 %v2936_v0 }
 0x7d4   :  { %2583 = vmatpush3.bf16.msra.mxu1 %v3488_v61  ;;  %v2672_v61 = vld [vmem:[#allocation9 + $0x18] sm:$0xff]  }
 0x7d5   :  { %2584 = vmatprep.subr.bf16.mxu1 %v2936_v0 }
 0x7d6   :  { %2603 = vmatpush3.bf16.msra.mxu0 %v2672_v61 }
 0x7d7   :  { %2604 = vmatprep.subr.bf16.mxu0 %v2936_v0 }
 0x7d8   :  { %2585 = vmatpush3.bf16.msra.mxu1 %v3494_v62  ;;  %v2673_v62 = vld [vmem:[#allocation9 + $0x20] sm:$0xff]  }
 0x7d9   :  { %2586 = vmatprep.subr.bf16.mxu1 %v2936_v0 }
 0x7da   :  { %2605 = vmatpush3.bf16.msra.mxu0 %v2673_v62 }
 0x7db   :  { %2606 = vmatprep.subr.bf16.mxu0 %v2936_v0 }
 0x7dc   :  { %2587 = vmatpush3.bf16.msra.mxu1 %v3500_v63  ;;  %v2674_v63 = vld [vmem:[#allocation9 + $0x28] sm:$0xff]  }
 0x7dd   :  { %2588 = vmatprep.subr.bf16.mxu1 %v2936_v0 }
 0x7de   :  { %2607 = vmatpush3.bf16.msra.mxu0 %v2674_v63 }
 0x7df   :  { %2608 = vmatprep.subr.bf16.mxu0 %v2936_v0 }
 0x7e0   :  { %2589 = vmatpush3.bf16.msra.mxu1 %v3586_v26 }
 0x7e1   :  { %2590 = vmatprep.subr.bf16.mxu1 %v2936_v0 }
 0x7e2   :  { %2609 = vmatpush3.bf16.msra.mxu0 %v2675_v37 }
 0x7e3   :  { %2610 = vmatprep.subr.bf16.mxu0 %v2936_v0 }
 0x7e4   :  { %2591 = vmatpush3.bf16.msra.mxu1 %v3592_v42 }
 0x7e6   :  { %2611 = vmatpush3.bf16.msra.mxu0 %v2676_v36 }
 0x7e7   :  { %2593 = vmatmul.mubr.bf16.vlgmr.msra.gmra.mrb[52].mxu1 %v1510_v35 }
 0x89a   :  { %v1547_v44 = vpop.f32.mrb[48].mxu1  ;;  %v1587_v38 = vpop.f32.mrb[44].mxu0 }
 0x89b   :  { %v1593_v45 = vadd.f32 %v1547_v44, %v1512_v43  ;;  %v2554_v46 = vpop.f32.mrb[49].mxu1  ;;  %v2574_v40 = vpop.f32.mrb[45].mxu0  ;;  %v1648_v11 = vadd.f32 %v1646_v8, %v1587_v38 }
 0x89c   :  { %v1550_v47 = vpop.f32.mrb[50].mxu1  ;;  %v1590_v48 = vpop.f32.mrb[46].mxu0 }
 0x89d   :  { %v1864_v49 = vmul.f32 -1.442695, %v1593_v45  ;;  %v2555_v50 = vpop.f32.mrb[51].mxu1  ;;  %v2575_v6 = vpop.f32.mrb[47].mxu0  ;;  %v1865_v14 = vmul.f32 -1.442695, %v1648_v11 }
 0x89f   :  { %2747 = vpow2.f32 %v1864_v49 }
 0x8a0   :  { %2749 = vpow2.f32 %v1865_v14 }
 0x8a9   :  { %v2748_v17 = vpop.eup %2747 }
 0x8aa   :  { %v1597_v19 = vadd.f32 1.0, %v2748_v17  ;;  %v2750_v0 = vpop.eup %2749 }
 0x8ab   :  { %v1652_v51 = vadd.f32 1.0, %v2750_v0 }
 0x8ac   :  { %2751 = vrcp.f32 %v1597_v19 }
 0x8ad   :  { %2753 = vrcp.f32 %v1652_v51 }
 0x8b6   :  { %v2752_v27 = vpop.eup %2751 }
 0x8b7   :  { %v2754_v54 = vpop.eup %2753 }
 0x8b8   :  { %v1655_v55 = vsub.f32 1.0, %v2754_v54  ;;  %v1657_v58 = vmul.f32 %v2754_v54, %v3623_v34 }
 0x8ba   :  { %v1634_v13 = vpop.f32.mrb[52].mxu1 }
 0x8bb   :  { %v1635_v26 = vadd.f32 %v3619_v9, %v1634_v13  ;;  %v2594_v42 = vpop.f32.mrb[53].mxu1 }
 0x8bc   :  { %v1637_v29 = vpop.f32.mrb[54].mxu1 }
 0x8bd   :  { %v1640_v33 = vmul.f32 %v2752_v27, %v1635_v26  ;;  %v2595_v52 = vpop.f32.mrb[55].mxu1 }
 0x8bf   :  { %v1644_v53 = vadd.f32 %v1642_v31, %v1640_v33 }
 0x8c1   :  { %2755 = vtanh.f32 %v1644_v53 }
 0x8cb   :  { %v2756_v56 = vpop.eup %2755 }
 0x8cc   :  { %v1656_v57 = vmul.f32 %v2756_v56, %v1655_v55 }
 0x8ce   :  { %v1658_v1 = vadd.f32 %v1657_v58, %v1656_v57 }
 0x8d0   :  { %v1659_v2 = vpack.c.bf16 %v1658_v1, %v1658_v1  ;;  %1765 = vst [vmem:[#allocation12] sm:$0x1] %v1658_v1 }
 0x8d2   :  { %2613 = vmatmul.mubr.bf16.vlgmr.msra.gmra.mrb[48].mxu0 %v1659_v2 }
 0x9a5   :  { %v1759_v3 = vpop.f32.mrb[48].mxu0 }
 0x9a6   :  { %v1760_v41 = vadd.f32 %v1759_v3, %v1676_v39  ;;  %v2614_v4 = vpop.f32.mrb[49].mxu0 }
 0x9a7   :  { %v1762_v5 = vpop.f32.mrb[50].mxu0 }
 0x9a8   :  { %v2615_v7 = vpop.f32.mrb[51].mxu0  ;;  %v1767_v9 = vsel %vm1766_vm2, %v1760_v41, -inf }
 0x9a9   :  { %1768 = vmax.xlane.f32.xlu0 %v1767_v9 }
 0xa36   :  { %v1769_v10 = vpop.xlane.xlu0 %1768 }
 0xa37   :  { %v1770_v12 = vsub.f32 %v1760_v41, %v1769_v10 }
 0xa39   :  { %v1771_v15 = vmul.f32 1.442695, %v1770_v12 }
 0xa3b   :  { %2757 = vpow2.f32 %v1771_v15 }
 0xa45   :  { %v2758_v16 = vpop.eup %2757 }
 0xa46   :  { %v1773_v18 = vsel %vm1766_vm2, %v2758_v16, 0.0 }
 0xa47   :  { %1774 = vadd.xlane.f32.xlu0 %v1773_v18 }
 0xa48   :  { %2885 = shalt.err (!%p2882_p8)
}
 0xa49   :  { %s2886_s28 = scalar_lea.hbm %s3691_s9, 16 }
 0xa4a   :  { %p2887_p9 = scmp.ne.s32.totalorder %s3691_s9, %s2886_s28  ;;  %p2890_p10 = scmp.lt.u32.totalorder %s2886_s28, %s3691_s9 }
 0xa4c   :  { %p2892_p11 = pnand %p2890_p10, %p2887_p9 }
 0xa4e   :  { %2895 = shalt.err (!%p2892_p11)
}
 0xa4f   :  { %1800 = dma.vmem_to_hbm [thread:$0]  %s1798_s25, 16, %s3691_s9, [#allocation13]  }
 0xa50   :  { %s2940_s10 = smov [#allocation11]  }
 0xa51   :  { %s1787_s14 = sshll.u32 %s2940_s10, 4  ;;  %s1788_s14 = int_to_ptr.vmem [resolvable:$true] %s1787_s14 }
 0xa52   :  { %s2896_s3 = scalar_lea.vmem %s1788_s14, 16  ;;  %s2900_s19 = scalar_lea.vmem %s1788_s14, 32 }
 0xa53   :  { %p2897_p12 = scmp.ne.s32.totalorder %s1788_s14, %s2896_s3  ;;  %p2901_p13 = scmp.lt.s32.totalorder %s1788_s14, %s1788_s14 }
 0xa54   :  { %p2902_p0 = scmp.lt.s32.totalorder %s2900_s19, %s2896_s3 }
 0xa56   :  { %p2903_p1 = por %p2902_p0, %p2901_p13 }
 0xa58   :  { %p2904_p2 = pnand %p2903_p1, %p2897_p12 }
 0xad4   :  { %v1775_v20 = vpop.xlane.xlu0 %1774 }
 0xad5   :  { %2759 = vlog2.f32 %v1775_v20 }
 0xadf   :  { %v2760_v22 = vpop.eup %2759 }
 0xae0   :  { %v1777_v21 = vmul.f32 0.6931472, %v2760_v22 }
 0xae2   :  { %v1778_v23 = vadd.f32 %v1777_v21, %v1769_v10 }
 0xae4   :  { %v1779_v25 = vsub.f32 %v1760_v41, %v1778_v23 }
 0xae6   :  { %1780 = vst [vmem:[#allocation11] sm:$0x1] %v1779_v25 }
 0xae7   :  { %2907 = shalt.err (!%p2904_p2)
}
 0xae8   :  { %s2908_s26 = scalar_lea.hbm %s3690_s8, 16 }
 0xae9   :  { %p2909_p3 = scmp.ne.s32.totalorder %s3690_s8, %s2908_s26  ;;  %p2912_p4 = scmp.lt.u32.totalorder %s2908_s26, %s3690_s8 }
 0xaeb   :  { %p2914_p5 = pnand %p2912_p4, %p2909_p3 }
 0xaed   :  { %2917 = shalt.err (!%p2914_p5)
}
 0xaee   :  { %1790 = dma.vmem_to_hbm [thread:$0]  %s1788_s14, 16, %s3690_s8, [#allocation5]  }
 0xaef   :  { %2924 = dma.done.wait [#allocation5], 16  }
 0xaf0   :  { %2925 = vsyncadd [#allocation5], 4294967280 }
 0xaf1   :  { %2926 = dma.done.wait [#allocation13], 16  }
 0xaf2   :  { %2927 = vsyncadd [#allocation13], 4294967280 }
 0xaf3   :  { %1807 = vsyncpa [#allocation4], 1 }
 0xaf4   :  { %1808 = vsyncpa [#allocation7], 1 }
 0xaf5   :  { %1809 = vsyncpa [#allocation10], 1 }
 0xaf6   :  { %1810 = vsyncpa [#allocation5], 1 }
 0xaf7   :  { %1811 = vsyncpa [#allocation13], 1 }

</bundles_post_ra>
